<compile_context>
chip_gen: v6e
topology: v6e:2x2x1
jax: 0.10.0
libtpu: 0.0.40
codegen_flags: <defaults>
</compile_context>

<pallas_src>
import functools
import math

import jax
import jax.numpy as jnp
import numpy as np
from jax import lax
from jax.experimental import pallas as pl
from jax.experimental.pallas import tpu as pltpu

_LN_EPS = 1e-5


def _encoder_kernel(x_ref, wqkv_ref, bqkv_ref, wo_ref, bo_ref,
                    ln_g_ref, ln_b_ref, w1_ref, b1_ref, w2_ref, b2_ref,
                    out_ref, *, num_heads, head_dim, seq_len, batch_tile,
                    compute_dtype):
    hd_total = num_heads * head_dim

    def _mm(a, b, dims):
        # Cast operands to the MXU compute dtype (bf16 on v6e/v7x for ~2x MXU
        # throughput); always accumulate in f32.
        return lax.dot_general(a.astype(compute_dtype), b.astype(compute_dtype),
                               (dims, ((), ())),
                               preferred_element_type=jnp.float32)

    x = x_ref[...]                                    # (Bt*S, in_dim) f32

    # --- fused QKV projection, transposed orientation (ONE MXU pass) --------
    #   qkvT[f, n] = sum_i Wqkv[i, f] * x[n, i]   ->  (3*H*D, Bt*S)
    # Features live on the sublane axis, so every per-head slice below is a
    # cheap sublane slice, never a masked 32-lane slice.
    qkvT = _mm(wqkv_ref[...], x, ((0,), (1,))) + bqkv_ref[...]

    scale = 1.0 / math.sqrt(head_dim)

    proj_rows = []
    for b in range(batch_tile):                       # static unroll, small Bt
        if batch_tile > 1:
            qkvT_b = qkvT[:, b * seq_len:(b + 1) * seq_len]     # (3HD, S)
        else:
            qkvT_b = qkvT

        oT_heads = []
        for h in range(num_heads):                    # static unroll, small H
            lo = h * head_dim
            qT = qkvT_b[lo:lo + head_dim, :]                              # (D, S)
            kT = qkvT_b[hd_total + lo:hd_total + lo + head_dim, :]        # (D, S)
            vT = qkvT_b[2 * hd_total + lo:2 * hd_total + lo + head_dim, :]
            # scores = Qh @ Kh^T / sqrt(d_k)   (contract D; transposes fold
            # into the MXU, no data movement)
            s = _mm(qT, kT, ((0,), (0,))) * scale                         # (S, S)
            s = s - jnp.max(s, axis=-1, keepdims=True)
            p = jnp.exp(s)
            # divide -> EUP reciprocal (free slot), off the VPU critical path
            p = p * pl.reciprocal(jnp.sum(p, axis=-1, keepdims=True),
                                  approx=True)
            # Oh^T = Vh^T @ P^T                                             (D, S)
            oT_heads.append(_mm(vT, p, ((1,), (1,))))

        # concat along sublanes -> a single K = H*D matmul against Wo
        oT_all = jnp.concatenate(oT_heads, axis=0)                        # (HD, S)
        proj_rows.append(_mm(oT_all, wo_ref[...], ((0,), (0,))))          # (S, in)

    proj = (jnp.concatenate(proj_rows, axis=0) if batch_tile > 1
            else proj_rows[0]) + bo_ref[...]                              # (Bt*S, in)

    # --- residual + LayerNorm over in_dim (statistics in f32) ---------------
    y = x + proj
    mean = jnp.mean(y, axis=-1, keepdims=True)
    var = jnp.mean(jnp.square(y - mean), axis=-1, keepdims=True)
    yn = (y - mean) * lax.rsqrt(var + _LN_EPS)
    yn = yn * ln_g_ref[...] + ln_b_ref[...]

    # --- FeedForward: relu(Linear) -> relu(Linear) ---------------------------
    h1 = jnp.maximum(_mm(yn, w1_ref[...], ((1,), (0,))) + b1_ref[...], 0.0)
    h2 = jnp.maximum(_mm(h1, w2_ref[...], ((1,), (0,))) + b2_ref[...], 0.0)

    out_ref[...] = h2                                  # single lane-dense store


def encoder_forward(x, params, num_heads, *, batch_tile=None,
                    compute_dtype=jnp.float32):
    """x: (B, S, in_dim) f32.  params: fused/transposed weights (see __main__).

    batch_tile: batch elements folded into each grid step.
      * None (default) -> fold the whole batch into one grid step: best on the
        single-TensorCore v5e/v6e (no per-step overhead, bigger matmul M).
      * On v7x set batch_tile = B // 2 (or 1) so the "parallel" grid axis has
        at least 2 steps and both TensorCores stay busy.
    compute_dtype: jnp.float32 (exact) or jnp.bfloat16 (v6e/v7x MXU fast path;
      accumulation, softmax and LayerNorm stats stay in f32).
    """
    B, S, in_dim = x.shape
    hd3 = params["wqkv"].shape[1]
    hd_total = hd3 // 3
    head_dim = hd_total // num_heads
    ffn_dim = params["w1"].shape[1]

    if batch_tile is None:
        batch_tile = B
    assert B % batch_tile == 0, "batch must be divisible by batch_tile"
    grid = (B // batch_tile,)
    rows = batch_tile * S

    # Host-side cast of the matmul weights to the compute dtype (halves weight
    # DMA bytes for bf16); biases / LN params stay f32.
    wqkv = params["wqkv"].astype(compute_dtype)
    wo = params["wo"].astype(compute_dtype)
    w1 = params["w1"].astype(compute_dtype)
    w2 = params["w2"].astype(compute_dtype)

    kernel = functools.partial(
        _encoder_kernel, num_heads=num_heads, head_dim=head_dim, seq_len=S,
        batch_tile=batch_tile, compute_dtype=compute_dtype)

    def _rep(shape):
        # Grid-invariant full-array block (constant index map -> fetched once).
        # NOTE: if MLIR inspection ever shows these being double-buffered,
        # switch to pipeline_mode=pl.Buffered(1) to save VMEM at large dims.
        return pl.BlockSpec(shape, lambda i: (0,) * len(shape))

    grid_spec = pltpu.PrefetchScalarGridSpec(
        num_scalar_prefetch=0,
        grid=grid,
        in_specs=[
            pl.BlockSpec((rows, in_dim), lambda i: (i, 0)),   # x, batch-tiled
            _rep((in_dim, hd3)), _rep((hd3, 1)),              # Wqkv, bqkv^T
            _rep((hd_total, in_dim)), _rep((1, in_dim)),      # Wo, bo
            _rep((1, in_dim)), _rep((1, in_dim)),             # LN gamma, beta
            _rep((in_dim, ffn_dim)), _rep((1, ffn_dim)),      # W1, b1
            _rep((ffn_dim, in_dim)), _rep((1, in_dim)),       # W2, b2
        ],
        out_specs=pl.BlockSpec((rows, in_dim), lambda i: (i, 0)),
    )

    x2 = x.reshape(B * S, in_dim)                      # free layout reshape
    out = pl.pallas_call(
        kernel,
        out_shape=jax.ShapeDtypeStruct((B * S, in_dim), jnp.float32),
        grid_spec=grid_spec,
        compiler_params=pltpu.CompilerParams(
            dimension_semantics=("parallel",),         # batch tiles independent
        ),
    )(x2, wqkv, params["bqkvT"], wo, params["bo"],
      params["ln_g"], params["ln_b"], w1, params["b1"], w2, params["b2"])
    return out.reshape(B, S, in_dim)


if __name__ == "__main__":
    key = jax.random.PRNGKey(0)

    # Encoder(in_dim, out_dim, num_heads); out_dim doubles as head_dim and the
    # FFN hidden size in the reference module.
    in_dim, out_dim, num_heads = 128, 32, 4
    batch, seq = 2, 8
    hd_total = num_heads * out_dim

    keys = jax.random.split(key, 9)

    def linear_init(k, fan_in, fan_out):
        # nn.Linear default: U(-1/sqrt(fan_in), 1/sqrt(fan_in)); stored (in, out)
        bound = 1.0 / float(np.sqrt(fan_in))
        kw, kb = jax.random.split(k)
        w = jax.random.uniform(kw, (fan_in, fan_out), jnp.float32, -bound, bound)
        b = jax.random.uniform(kb, (1, fan_out), jnp.float32, -bound, bound)
        return w, b

    wq, bq = linear_init(keys[0], in_dim, hd_total)
    wk, bk = linear_init(keys[1], in_dim, hd_total)
    wv, bv = linear_init(keys[2], in_dim, hd_total)
    wo, bo = linear_init(keys[3], hd_total, in_dim)
    w1, b1 = linear_init(keys[4], in_dim, out_dim)
    w2, b2 = linear_init(keys[5], out_dim, in_dim)
    ln_g = jax.random.uniform(keys[6], (1, in_dim), jnp.float32, 0.5, 1.5)
    ln_b = jax.random.uniform(keys[7], (1, in_dim), jnp.float32, -0.5, 0.5)
    x = jax.random.normal(keys[8], (batch, seq, in_dim), dtype=jnp.float32)

    params = dict(
        wqkv=jnp.concatenate([wq, wk, wv], axis=1),        # (in_dim, 3*H*D)
        bqkvT=jnp.concatenate([bq, bk, bv], axis=1).T,     # (3*H*D, 1)
        wo=wo, bo=bo, ln_g=ln_g, ln_b=ln_b,
        w1=w1, b1=b1, w2=w2, b2=b2)

    # ---------------- pure-JAX reference (mirrors the PyTorch forward) ------
    def ref_fn(x):
        q = x @ wq + bq[0]
        k = x @ wk + bk[0]
        v = x @ wv + bv[0]

        def split(t):
            return t.reshape(batch, seq, num_heads, out_dim).transpose(0, 2, 1, 3)

        qh, kh, vh = split(q), split(k), split(v)
        scores = jnp.einsum("bhqd,bhkd->bhqk", qh, kh) / np.sqrt(out_dim)
        p = jax.nn.softmax(scores, axis=-1)
        o = jnp.einsum("bhqk,bhkd->bhqd", p, vh)
        o = o.transpose(0, 2, 1, 3).reshape(batch, seq, hd_total)
        proj = o @ wo + bo[0]
        y = x + proj
        mean = y.mean(-1, keepdims=True)
        var = ((y - mean) ** 2).mean(-1, keepdims=True)
        yn = (y - mean) / jnp.sqrt(var + _LN_EPS) * ln_g[0] + ln_b[0]
        h1 = jax.nn.relu(yn @ w1 + b1[0])
        return jax.nn.relu(h1 @ w2 + b2[0])

    ref = np.asarray(ref_fn(x))

    # 1) f32, whole batch folded into one grid step (single-TC v5e/v6e config).
    #    Tolerance accounts for the approximate EUP reciprocal in the softmax.
    out = jax.block_until_ready(encoder_forward(x, params, num_heads))
    assert out.shape == (batch, seq, in_dim)
    assert np.allclose(np.asarray(out), ref, rtol=1e-2, atol=1e-2), (
        float(np.max(np.abs(np.asarray(out) - ref))))

    # 2) f32, one batch element per grid step ("parallel" axis -> both v7x TCs).
    out_p = jax.block_until_ready(
        encoder_forward(x, params, num_heads, batch_tile=1))
    assert np.allclose(np.asarray(out_p), ref, rtol=1e-2, atol=1e-2), (
        float(np.max(np.abs(np.asarray(out_p) - ref))))

    # 3) bf16 MXU operands (v6e/v7x fast path); f32 stats, looser tolerance.
    out_bf = jax.block_until_ready(
        encoder_forward(x, params, num_heads, compute_dtype=jnp.bfloat16))
    assert np.allclose(np.asarray(out_bf), ref, rtol=1e-1, atol=1e-1), (
        float(np.max(np.abs(np.asarray(out_bf) - ref))))

    print("KERNEL_OK")
</pallas_src>

<mosaic_0001>
module attributes {stable_mosaic.version = 11 : i64} {
  func.func @_encoder_kernel(%arg0: i32, %arg1: memref<16x128xf32, #tpu.memory_space<vmem>>, %arg2: memref<128x384xf32, #tpu.memory_space<vmem>>, %arg3: memref<384x1xf32, #tpu.memory_space<vmem>>, %arg4: memref<128x128xf32, #tpu.memory_space<vmem>>, %arg5: memref<1x128xf32, #tpu.memory_space<vmem>>, %arg6: memref<1x128xf32, #tpu.memory_space<vmem>>, %arg7: memref<1x128xf32, #tpu.memory_space<vmem>>, %arg8: memref<128x32xf32, #tpu.memory_space<vmem>>, %arg9: memref<1x32xf32, #tpu.memory_space<vmem>>, %arg10: memref<32x128xf32, #tpu.memory_space<vmem>>, %arg11: memref<1x128xf32, #tpu.memory_space<vmem>>, %arg12: memref<16x128xf32, #tpu.memory_space<vmem>>) attributes {dimension_semantics = [#tpu.dimension_semantics<parallel>], iteration_bounds = array<i64: 1>, scalar_prefetch = 0 : i64, scratch_operands = 0 : i64, tpu.core_type = #tpu.core_type<tc>, window_params = [{transform_indices = @transform_0, window_bounds = array<i64: 16, 128>}, {pipeline_mode = #tpu.pipeline_mode<synchronous>, transform_indices = @transform_1, window_bounds = array<i64: 128, 384>}, {pipeline_mode = #tpu.pipeline_mode<synchronous>, transform_indices = @transform_2, window_bounds = array<i64: 384, 1>}, {pipeline_mode = #tpu.pipeline_mode<synchronous>, transform_indices = @transform_3, window_bounds = array<i64: 128, 128>}, {pipeline_mode = #tpu.pipeline_mode<synchronous>, transform_indices = @transform_4, window_bounds = array<i64: 1, 128>}, {pipeline_mode = #tpu.pipeline_mode<synchronous>, transform_indices = @transform_5, window_bounds = array<i64: 1, 128>}, {pipeline_mode = #tpu.pipeline_mode<synchronous>, transform_indices = @transform_6, window_bounds = array<i64: 1, 128>}, {pipeline_mode = #tpu.pipeline_mode<synchronous>, transform_indices = @transform_7, window_bounds = array<i64: 128, 32>}, {pipeline_mode = #tpu.pipeline_mode<synchronous>, transform_indices = @transform_8, window_bounds = array<i64: 1, 32>}, {pipeline_mode = #tpu.pipeline_mode<synchronous>, transform_indices = @transform_9, window_bounds = array<i64: 32, 128>}, {pipeline_mode = #tpu.pipeline_mode<synchronous>, transform_indices = @transform_10, window_bounds = array<i64: 1, 128>}, {transform_indices = @transform_11, window_bounds = array<i64: 16, 128>}]} {
    %c0 = arith.constant 0 : index
    %c0_0 = arith.constant 0 : index
    %0 = vector.load %arg1[%c0, %c0_0] : memref<16x128xf32, #tpu.memory_space<vmem>>, vector<16x128xf32>
    %c0_1 = arith.constant 0 : index
    %c0_2 = arith.constant 0 : index
    %1 = vector.load %arg2[%c0_1, %c0_2] : memref<128x384xf32, #tpu.memory_space<vmem>>, vector<128x384xf32>
    %cst = arith.constant dense<0.000000e+00> : vector<384x16xf32>
    %2 = tpu.matmul %1, %0, %cst {dimension_numbers = #tpu.dot_dimension_numbers<[0], [1], [1], [0], [0, 1, 1, 0], [], []>} : vector<128x384xf32>, vector<16x128xf32>, vector<384x16xf32> -> vector<384x16xf32>
    %c0_3 = arith.constant 0 : index
    %c0_4 = arith.constant 0 : index
    %3 = vector.load %arg3[%c0_3, %c0_4] : memref<384x1xf32, #tpu.memory_space<vmem>>, vector<384x1xf32>
    %4 = vector.broadcast %3 : vector<384x1xf32> to vector<384x16xf32>
    %5 = arith.addf %2, %4 : vector<384x16xf32>
    %6 = vector.extract_strided_slice %5 {offsets = [0, 0], sizes = [384, 8], strides = [1, 1]} : vector<384x16xf32> to vector<384x8xf32>
    %7 = vector.extract_strided_slice %6 {offsets = [0, 0], sizes = [32, 8], strides = [1, 1]} : vector<384x8xf32> to vector<32x8xf32>
    %8 = vector.extract_strided_slice %6 {offsets = [128, 0], sizes = [32, 8], strides = [1, 1]} : vector<384x8xf32> to vector<32x8xf32>
    %9 = vector.extract_strided_slice %6 {offsets = [256, 0], sizes = [32, 8], strides = [1, 1]} : vector<384x8xf32> to vector<32x8xf32>
    %cst_5 = arith.constant dense<0.000000e+00> : vector<8x8xf32>
    %10 = tpu.matmul %7, %8, %cst_5 {dimension_numbers = #tpu.dot_dimension_numbers<[0], [0], [1], [1], [0, 1, 1, 1], [], []>} : vector<32x8xf32>, vector<32x8xf32>, vector<8x8xf32> -> vector<8x8xf32>
    %cst_6 = arith.constant 0.176776692 : f32
    %11 = vector.broadcast %cst_6 : f32 to vector<8x8xf32>
    %12 = arith.mulf %10, %11 : vector<8x8xf32>
    %cst_7 = arith.constant dense<0xFF800000> : vector<8xf32>
    %13 = vector.multi_reduction <maximumf>, %12, %cst_7 [1] : vector<8x8xf32> to vector<8xf32>
    %14 = vector.shape_cast %13 : vector<8xf32> to vector<8x1xf32>
    %15 = vector.broadcast %14 : vector<8x1xf32> to vector<8x8xf32>
    %16 = arith.subf %12, %15 : vector<8x8xf32>
    %17 = math.exp %16 : vector<8x8xf32>
    %cst_8 = arith.constant dense<0.000000e+00> : vector<8xf32>
    %18 = vector.multi_reduction <add>, %17, %cst_8 [1] : vector<8x8xf32> to vector<8xf32>
    %19 = vector.shape_cast %18 : vector<8xf32> to vector<8x1xf32>
    %20 = tpu.reciprocal %19 {approx = true} : vector<8x1xf32> -> vector<8x1xf32>
    %21 = vector.broadcast %20 : vector<8x1xf32> to vector<8x8xf32>
    %22 = arith.mulf %17, %21 : vector<8x8xf32>
    %cst_9 = arith.constant dense<0.000000e+00> : vector<32x8xf32>
    %23 = tpu.matmul %9, %22, %cst_9 {dimension_numbers = #tpu.dot_dimension_numbers<[1], [1], [0], [0], [0, 0, 1, 0], [], []>} : vector<32x8xf32>, vector<8x8xf32>, vector<32x8xf32> -> vector<32x8xf32>
    %24 = vector.extract_strided_slice %6 {offsets = [32, 0], sizes = [32, 8], strides = [1, 1]} : vector<384x8xf32> to vector<32x8xf32>
    %25 = vector.extract_strided_slice %6 {offsets = [160, 0], sizes = [32, 8], strides = [1, 1]} : vector<384x8xf32> to vector<32x8xf32>
    %26 = vector.extract_strided_slice %6 {offsets = [288, 0], sizes = [32, 8], strides = [1, 1]} : vector<384x8xf32> to vector<32x8xf32>
    %cst_10 = arith.constant dense<0.000000e+00> : vector<8x8xf32>
    %27 = tpu.matmul %24, %25, %cst_10 {dimension_numbers = #tpu.dot_dimension_numbers<[0], [0], [1], [1], [0, 1, 1, 1], [], []>} : vector<32x8xf32>, vector<32x8xf32>, vector<8x8xf32> -> vector<8x8xf32>
    %cst_11 = arith.constant 0.176776692 : f32
    %28 = vector.broadcast %cst_11 : f32 to vector<8x8xf32>
    %29 = arith.mulf %27, %28 : vector<8x8xf32>
    %cst_12 = arith.constant dense<0xFF800000> : vector<8xf32>
    %30 = vector.multi_reduction <maximumf>, %29, %cst_12 [1] : vector<8x8xf32> to vector<8xf32>
    %31 = vector.shape_cast %30 : vector<8xf32> to vector<8x1xf32>
    %32 = vector.broadcast %31 : vector<8x1xf32> to vector<8x8xf32>
    %33 = arith.subf %29, %32 : vector<8x8xf32>
    %34 = math.exp %33 : vector<8x8xf32>
    %cst_13 = arith.constant dense<0.000000e+00> : vector<8xf32>
    %35 = vector.multi_reduction <add>, %34, %cst_13 [1] : vector<8x8xf32> to vector<8xf32>
    %36 = vector.shape_cast %35 : vector<8xf32> to vector<8x1xf32>
    %37 = tpu.reciprocal %36 {approx = true} : vector<8x1xf32> -> vector<8x1xf32>
    %38 = vector.broadcast %37 : vector<8x1xf32> to vector<8x8xf32>
    %39 = arith.mulf %34, %38 : vector<8x8xf32>
    %cst_14 = arith.constant dense<0.000000e+00> : vector<32x8xf32>
    %40 = tpu.matmul %26, %39, %cst_14 {dimension_numbers = #tpu.dot_dimension_numbers<[1], [1], [0], [0], [0, 0, 1, 0], [], []>} : vector<32x8xf32>, vector<8x8xf32>, vector<32x8xf32> -> vector<32x8xf32>
    %41 = vector.extract_strided_slice %6 {offsets = [64, 0], sizes = [32, 8], strides = [1, 1]} : vector<384x8xf32> to vector<32x8xf32>
    %42 = vector.extract_strided_slice %6 {offsets = [192, 0], sizes = [32, 8], strides = [1, 1]} : vector<384x8xf32> to vector<32x8xf32>
    %43 = vector.extract_strided_slice %6 {offsets = [320, 0], sizes = [32, 8], strides = [1, 1]} : vector<384x8xf32> to vector<32x8xf32>
    %cst_15 = arith.constant dense<0.000000e+00> : vector<8x8xf32>
    %44 = tpu.matmul %41, %42, %cst_15 {dimension_numbers = #tpu.dot_dimension_numbers<[0], [0], [1], [1], [0, 1, 1, 1], [], []>} : vector<32x8xf32>, vector<32x8xf32>, vector<8x8xf32> -> vector<8x8xf32>
    %cst_16 = arith.constant 0.176776692 : f32
    %45 = vector.broadcast %cst_16 : f32 to vector<8x8xf32>
    %46 = arith.mulf %44, %45 : vector<8x8xf32>
    %cst_17 = arith.constant dense<0xFF800000> : vector<8xf32>
    %47 = vector.multi_reduction <maximumf>, %46, %cst_17 [1] : vector<8x8xf32> to vector<8xf32>
    %48 = vector.shape_cast %47 : vector<8xf32> to vector<8x1xf32>
    %49 = vector.broadcast %48 : vector<8x1xf32> to vector<8x8xf32>
    %50 = arith.subf %46, %49 : vector<8x8xf32>
    %51 = math.exp %50 : vector<8x8xf32>
    %cst_18 = arith.constant dense<0.000000e+00> : vector<8xf32>
    %52 = vector.multi_reduction <add>, %51, %cst_18 [1] : vector<8x8xf32> to vector<8xf32>
    %53 = vector.shape_cast %52 : vector<8xf32> to vector<8x1xf32>
    %54 = tpu.reciprocal %53 {approx = true} : vector<8x1xf32> -> vector<8x1xf32>
    %55 = vector.broadcast %54 : vector<8x1xf32> to vector<8x8xf32>
    %56 = arith.mulf %51, %55 : vector<8x8xf32>
    %cst_19 = arith.constant dense<0.000000e+00> : vector<32x8xf32>
    %57 = tpu.matmul %43, %56, %cst_19 {dimension_numbers = #tpu.dot_dimension_numbers<[1], [1], [0], [0], [0, 0, 1, 0], [], []>} : vector<32x8xf32>, vector<8x8xf32>, vector<32x8xf32> -> vector<32x8xf32>
    %58 = vector.extract_strided_slice %6 {offsets = [96, 0], sizes = [32, 8], strides = [1, 1]} : vector<384x8xf32> to vector<32x8xf32>
    %59 = vector.extract_strided_slice %6 {offsets = [224, 0], sizes = [32, 8], strides = [1, 1]} : vector<384x8xf32> to vector<32x8xf32>
    %60 = vector.extract_strided_slice %6 {offsets = [352, 0], sizes = [32, 8], strides = [1, 1]} : vector<384x8xf32> to vector<32x8xf32>
    %cst_20 = arith.constant dense<0.000000e+00> : vector<8x8xf32>
    %61 = tpu.matmul %58, %59, %cst_20 {dimension_numbers = #tpu.dot_dimension_numbers<[0], [0], [1], [1], [0, 1, 1, 1], [], []>} : vector<32x8xf32>, vector<32x8xf32>, vector<8x8xf32> -> vector<8x8xf32>
    %cst_21 = arith.constant 0.176776692 : f32
    %62 = vector.broadcast %cst_21 : f32 to vector<8x8xf32>
    %63 = arith.mulf %61, %62 : vector<8x8xf32>
    %cst_22 = arith.constant dense<0xFF800000> : vector<8xf32>
    %64 = vector.multi_reduction <maximumf>, %63, %cst_22 [1] : vector<8x8xf32> to vector<8xf32>
    %65 = vector.shape_cast %64 : vector<8xf32> to vector<8x1xf32>
    %66 = vector.broadcast %65 : vector<8x1xf32> to vector<8x8xf32>
    %67 = arith.subf %63, %66 : vector<8x8xf32>
    %68 = math.exp %67 : vector<8x8xf32>
    %cst_23 = arith.constant dense<0.000000e+00> : vector<8xf32>
    %69 = vector.multi_reduction <add>, %68, %cst_23 [1] : vector<8x8xf32> to vector<8xf32>
    %70 = vector.shape_cast %69 : vector<8xf32> to vector<8x1xf32>
    %71 = tpu.reciprocal %70 {approx = true} : vector<8x1xf32> -> vector<8x1xf32>
    %72 = vector.broadcast %71 : vector<8x1xf32> to vector<8x8xf32>
    %73 = arith.mulf %68, %72 : vector<8x8xf32>
    %cst_24 = arith.constant dense<0.000000e+00> : vector<32x8xf32>
    %74 = tpu.matmul %60, %73, %cst_24 {dimension_numbers = #tpu.dot_dimension_numbers<[1], [1], [0], [0], [0, 0, 1, 0], [], []>} : vector<32x8xf32>, vector<8x8xf32>, vector<32x8xf32> -> vector<32x8xf32>
    %75 = tpu.concatenate %23, %40, %57, %74 in 0 : vector<32x8xf32>, vector<32x8xf32>, vector<32x8xf32>, vector<32x8xf32> -> vector<128x8xf32>
    %c0_25 = arith.constant 0 : index
    %c0_26 = arith.constant 0 : index
    %76 = vector.load %arg4[%c0_25, %c0_26] : memref<128x128xf32, #tpu.memory_space<vmem>>, vector<128x128xf32>
    %cst_27 = arith.constant dense<0.000000e+00> : vector<8x128xf32>
    %77 = tpu.matmul %75, %76, %cst_27 {dimension_numbers = #tpu.dot_dimension_numbers<[0], [0], [1], [1], [0, 1, 1, 1], [], []>} : vector<128x8xf32>, vector<128x128xf32>, vector<8x128xf32> -> vector<8x128xf32>
    %78 = vector.extract_strided_slice %5 {offsets = [0, 8], sizes = [384, 8], strides = [1, 1]} : vector<384x16xf32> to vector<384x8xf32>
    %79 = vector.extract_strided_slice %78 {offsets = [0, 0], sizes = [32, 8], strides = [1, 1]} : vector<384x8xf32> to vector<32x8xf32>
    %80 = vector.extract_strided_slice %78 {offsets = [128, 0], sizes = [32, 8], strides = [1, 1]} : vector<384x8xf32> to vector<32x8xf32>
    %81 = vector.extract_strided_slice %78 {offsets = [256, 0], sizes = [32, 8], strides = [1, 1]} : vector<384x8xf32> to vector<32x8xf32>
    %cst_28 = arith.constant dense<0.000000e+00> : vector<8x8xf32>
    %82 = tpu.matmul %79, %80, %cst_28 {dimension_numbers = #tpu.dot_dimension_numbers<[0], [0], [1], [1], [0, 1, 1, 1], [], []>} : vector<32x8xf32>, vector<32x8xf32>, vector<8x8xf32> -> vector<8x8xf32>
    %cst_29 = arith.constant 0.176776692 : f32
    %83 = vector.broadcast %cst_29 : f32 to vector<8x8xf32>
    %84 = arith.mulf %82, %83 : vector<8x8xf32>
    %cst_30 = arith.constant dense<0xFF800000> : vector<8xf32>
    %85 = vector.multi_reduction <maximumf>, %84, %cst_30 [1] : vector<8x8xf32> to vector<8xf32>
    %86 = vector.shape_cast %85 : vector<8xf32> to vector<8x1xf32>
    %87 = vector.broadcast %86 : vector<8x1xf32> to vector<8x8xf32>
    %88 = arith.subf %84, %87 : vector<8x8xf32>
    %89 = math.exp %88 : vector<8x8xf32>
    %cst_31 = arith.constant dense<0.000000e+00> : vector<8xf32>
    %90 = vector.multi_reduction <add>, %89, %cst_31 [1] : vector<8x8xf32> to vector<8xf32>
    %91 = vector.shape_cast %90 : vector<8xf32> to vector<8x1xf32>
    %92 = tpu.reciprocal %91 {approx = true} : vector<8x1xf32> -> vector<8x1xf32>
    %93 = vector.broadcast %92 : vector<8x1xf32> to vector<8x8xf32>
    %94 = arith.mulf %89, %93 : vector<8x8xf32>
    %cst_32 = arith.constant dense<0.000000e+00> : vector<32x8xf32>
    %95 = tpu.matmul %81, %94, %cst_32 {dimension_numbers = #tpu.dot_dimension_numbers<[1], [1], [0], [0], [0, 0, 1, 0], [], []>} : vector<32x8xf32>, vector<8x8xf32>, vector<32x8xf32> -> vector<32x8xf32>
    %96 = vector.extract_strided_slice %78 {offsets = [32, 0], sizes = [32, 8], strides = [1, 1]} : vector<384x8xf32> to vector<32x8xf32>
    %97 = vector.extract_strided_slice %78 {offsets = [160, 0], sizes = [32, 8], strides = [1, 1]} : vector<384x8xf32> to vector<32x8xf32>
    %98 = vector.extract_strided_slice %78 {offsets = [288, 0], sizes = [32, 8], strides = [1, 1]} : vector<384x8xf32> to vector<32x8xf32>
    %cst_33 = arith.constant dense<0.000000e+00> : vector<8x8xf32>
    %99 = tpu.matmul %96, %97, %cst_33 {dimension_numbers = #tpu.dot_dimension_numbers<[0], [0], [1], [1], [0, 1, 1, 1], [], []>} : vector<32x8xf32>, vector<32x8xf32>, vector<8x8xf32> -> vector<8x8xf32>
    %cst_34 = arith.constant 0.176776692 : f32
    %100 = vector.broadcast %cst_34 : f32 to vector<8x8xf32>
    %101 = arith.mulf %99, %100 : vector<8x8xf32>
    %cst_35 = arith.constant dense<0xFF800000> : vector<8xf32>
    %102 = vector.multi_reduction <maximumf>, %101, %cst_35 [1] : vector<8x8xf32> to vector<8xf32>
    %103 = vector.shape_cast %102 : vector<8xf32> to vector<8x1xf32>
    %104 = vector.broadcast %103 : vector<8x1xf32> to vector<8x8xf32>
    %105 = arith.subf %101, %104 : vector<8x8xf32>
    %106 = math.exp %105 : vector<8x8xf32>
    %cst_36 = arith.constant dense<0.000000e+00> : vector<8xf32>
    %107 = vector.multi_reduction <add>, %106, %cst_36 [1] : vector<8x8xf32> to vector<8xf32>
    %108 = vector.shape_cast %107 : vector<8xf32> to vector<8x1xf32>
    %109 = tpu.reciprocal %108 {approx = true} : vector<8x1xf32> -> vector<8x1xf32>
    %110 = vector.broadcast %109 : vector<8x1xf32> to vector<8x8xf32>
    %111 = arith.mulf %106, %110 : vector<8x8xf32>
    %cst_37 = arith.constant dense<0.000000e+00> : vector<32x8xf32>
    %112 = tpu.matmul %98, %111, %cst_37 {dimension_numbers = #tpu.dot_dimension_numbers<[1], [1], [0], [0], [0, 0, 1, 0], [], []>} : vector<32x8xf32>, vector<8x8xf32>, vector<32x8xf32> -> vector<32x8xf32>
    %113 = vector.extract_strided_slice %78 {offsets = [64, 0], sizes = [32, 8], strides = [1, 1]} : vector<384x8xf32> to vector<32x8xf32>
    %114 = vector.extract_strided_slice %78 {offsets = [192, 0], sizes = [32, 8], strides = [1, 1]} : vector<384x8xf32> to vector<32x8xf32>
    %115 = vector.extract_strided_slice %78 {offsets = [320, 0], sizes = [32, 8], strides = [1, 1]} : vector<384x8xf32> to vector<32x8xf32>
    %cst_38 = arith.constant dense<0.000000e+00> : vector<8x8xf32>
    %116 = tpu.matmul %113, %114, %cst_38 {dimension_numbers = #tpu.dot_dimension_numbers<[0], [0], [1], [1], [0, 1, 1, 1], [], []>} : vector<32x8xf32>, vector<32x8xf32>, vector<8x8xf32> -> vector<8x8xf32>
    %cst_39 = arith.constant 0.176776692 : f32
    %117 = vector.broadcast %cst_39 : f32 to vector<8x8xf32>
    %118 = arith.mulf %116, %117 : vector<8x8xf32>
    %cst_40 = arith.constant dense<0xFF800000> : vector<8xf32>
    %119 = vector.multi_reduction <maximumf>, %118, %cst_40 [1] : vector<8x8xf32> to vector<8xf32>
    %120 = vector.shape_cast %119 : vector<8xf32> to vector<8x1xf32>
    %121 = vector.broadcast %120 : vector<8x1xf32> to vector<8x8xf32>
    %122 = arith.subf %118, %121 : vector<8x8xf32>
    %123 = math.exp %122 : vector<8x8xf32>
    %cst_41 = arith.constant dense<0.000000e+00> : vector<8xf32>
    %124 = vector.multi_reduction <add>, %123, %cst_41 [1] : vector<8x8xf32> to vector<8xf32>
    %125 = vector.shape_cast %124 : vector<8xf32> to vector<8x1xf32>
    %126 = tpu.reciprocal %125 {approx = true} : vector<8x1xf32> -> vector<8x1xf32>
    %127 = vector.broadcast %126 : vector<8x1xf32> to vector<8x8xf32>
    %128 = arith.mulf %123, %127 : vector<8x8xf32>
    %cst_42 = arith.constant dense<0.000000e+00> : vector<32x8xf32>
    %129 = tpu.matmul %115, %128, %cst_42 {dimension_numbers = #tpu.dot_dimension_numbers<[1], [1], [0], [0], [0, 0, 1, 0], [], []>} : vector<32x8xf32>, vector<8x8xf32>, vector<32x8xf32> -> vector<32x8xf32>
    %130 = vector.extract_strided_slice %78 {offsets = [96, 0], sizes = [32, 8], strides = [1, 1]} : vector<384x8xf32> to vector<32x8xf32>
    %131 = vector.extract_strided_slice %78 {offsets = [224, 0], sizes = [32, 8], strides = [1, 1]} : vector<384x8xf32> to vector<32x8xf32>
    %132 = vector.extract_strided_slice %78 {offsets = [352, 0], sizes = [32, 8], strides = [1, 1]} : vector<384x8xf32> to vector<32x8xf32>
    %cst_43 = arith.constant dense<0.000000e+00> : vector<8x8xf32>
    %133 = tpu.matmul %130, %131, %cst_43 {dimension_numbers = #tpu.dot_dimension_numbers<[0], [0], [1], [1], [0, 1, 1, 1], [], []>} : vector<32x8xf32>, vector<32x8xf32>, vector<8x8xf32> -> vector<8x8xf32>
    %cst_44 = arith.constant 0.176776692 : f32
    %134 = vector.broadcast %cst_44 : f32 to vector<8x8xf32>
    %135 = arith.mulf %133, %134 : vector<8x8xf32>
    %cst_45 = arith.constant dense<0xFF800000> : vector<8xf32>
    %136 = vector.multi_reduction <maximumf>, %135, %cst_45 [1] : vector<8x8xf32> to vector<8xf32>
    %137 = vector.shape_cast %136 : vector<8xf32> to vector<8x1xf32>
    %138 = vector.broadcast %137 : vector<8x1xf32> to vector<8x8xf32>
    %139 = arith.subf %135, %138 : vector<8x8xf32>
    %140 = math.exp %139 : vector<8x8xf32>
    %cst_46 = arith.constant dense<0.000000e+00> : vector<8xf32>
    %141 = vector.multi_reduction <add>, %140, %cst_46 [1] : vector<8x8xf32> to vector<8xf32>
    %142 = vector.shape_cast %141 : vector<8xf32> to vector<8x1xf32>
    %143 = tpu.reciprocal %142 {approx = true} : vector<8x1xf32> -> vector<8x1xf32>
    %144 = vector.broadcast %143 : vector<8x1xf32> to vector<8x8xf32>
    %145 = arith.mulf %140, %144 : vector<8x8xf32>
    %cst_47 = arith.constant dense<0.000000e+00> : vector<32x8xf32>
    %146 = tpu.matmul %132, %145, %cst_47 {dimension_numbers = #tpu.dot_dimension_numbers<[1], [1], [0], [0], [0, 0, 1, 0], [], []>} : vector<32x8xf32>, vector<8x8xf32>, vector<32x8xf32> -> vector<32x8xf32>
    %147 = tpu.concatenate %95, %112, %129, %146 in 0 : vector<32x8xf32>, vector<32x8xf32>, vector<32x8xf32>, vector<32x8xf32> -> vector<128x8xf32>
    %c0_48 = arith.constant 0 : index
    %c0_49 = arith.constant 0 : index
    %148 = vector.load %arg4[%c0_48, %c0_49] : memref<128x128xf32, #tpu.memory_space<vmem>>, vector<128x128xf32>
    %cst_50 = arith.constant dense<0.000000e+00> : vector<8x128xf32>
    %149 = tpu.matmul %147, %148, %cst_50 {dimension_numbers = #tpu.dot_dimension_numbers<[0], [0], [1], [1], [0, 1, 1, 1], [], []>} : vector<128x8xf32>, vector<128x128xf32>, vector<8x128xf32> -> vector<8x128xf32>
    %150 = tpu.concatenate %77, %149 in 0 : vector<8x128xf32>, vector<8x128xf32> -> vector<16x128xf32>
    %c0_51 = arith.constant 0 : index
    %c0_52 = arith.constant 0 : index
    %151 = vector.load %arg5[%c0_51, %c0_52] : memref<1x128xf32, #tpu.memory_space<vmem>>, vector<1x128xf32>
    %152 = vector.broadcast %151 : vector<1x128xf32> to vector<16x128xf32>
    %153 = arith.addf %150, %152 : vector<16x128xf32>
    %154 = arith.addf %0, %153 : vector<16x128xf32>
    %cst_53 = arith.constant dense<0.000000e+00> : vector<16xf32>
    %155 = vector.multi_reduction <add>, %154, %cst_53 [1] : vector<16x128xf32> to vector<16xf32>
    %156 = vector.shape_cast %155 : vector<16xf32> to vector<16x1xf32>
    %cst_54 = arith.constant 1.280000e+02 : f32
    %157 = vector.broadcast %cst_54 : f32 to vector<16x1xf32>
    %158 = arith.divf %156, %157 : vector<16x1xf32>
    %159 = vector.broadcast %158 : vector<16x1xf32> to vector<16x128xf32>
    %160 = arith.subf %154, %159 : vector<16x128xf32>
    %161 = arith.mulf %160, %160 : vector<16x128xf32>
    %cst_55 = arith.constant dense<0.000000e+00> : vector<16xf32>
    %162 = vector.multi_reduction <add>, %161, %cst_55 [1] : vector<16x128xf32> to vector<16xf32>
    %163 = vector.shape_cast %162 : vector<16xf32> to vector<16x1xf32>
    %cst_56 = arith.constant 1.280000e+02 : f32
    %164 = vector.broadcast %cst_56 : f32 to vector<16x1xf32>
    %165 = arith.divf %163, %164 : vector<16x1xf32>
    %166 = vector.broadcast %158 : vector<16x1xf32> to vector<16x128xf32>
    %167 = arith.subf %154, %166 : vector<16x128xf32>
    %cst_57 = arith.constant 9.99999974E-6 : f32
    %168 = vector.broadcast %cst_57 : f32 to vector<16x1xf32>
    %169 = arith.addf %165, %168 : vector<16x1xf32>
    %170 = math.rsqrt %169 : vector<16x1xf32>
    %171 = vector.broadcast %170 : vector<16x1xf32> to vector<16x128xf32>
    %172 = arith.mulf %167, %171 : vector<16x128xf32>
    %c0_58 = arith.constant 0 : index
    %c0_59 = arith.constant 0 : index
    %173 = vector.load %arg6[%c0_58, %c0_59] : memref<1x128xf32, #tpu.memory_space<vmem>>, vector<1x128xf32>
    %174 = vector.broadcast %173 : vector<1x128xf32> to vector<16x128xf32>
    %175 = arith.mulf %172, %174 : vector<16x128xf32>
    %c0_60 = arith.constant 0 : index
    %c0_61 = arith.constant 0 : index
    %176 = vector.load %arg7[%c0_60, %c0_61] : memref<1x128xf32, #tpu.memory_space<vmem>>, vector<1x128xf32>
    %177 = vector.broadcast %176 : vector<1x128xf32> to vector<16x128xf32>
    %178 = arith.addf %175, %177 : vector<16x128xf32>
    %c0_62 = arith.constant 0 : index
    %c0_63 = arith.constant 0 : index
    %179 = vector.load %arg8[%c0_62, %c0_63] : memref<128x32xf32, #tpu.memory_space<vmem>>, vector<128x32xf32>
    %cst_64 = arith.constant dense<0.000000e+00> : vector<16x32xf32>
    %180 = tpu.matmul %178, %179, %cst_64 {dimension_numbers = #tpu.dot_dimension_numbers<[1], [0], [0], [1], [0, 0, 1, 1], [], []>} : vector<16x128xf32>, vector<128x32xf32>, vector<16x32xf32> -> vector<16x32xf32>
    %c0_65 = arith.constant 0 : index
    %c0_66 = arith.constant 0 : index
    %181 = vector.load %arg9[%c0_65, %c0_66] : memref<1x32xf32, #tpu.memory_space<vmem>>, vector<1x32xf32>
    %182 = vector.broadcast %181 : vector<1x32xf32> to vector<16x32xf32>
    %183 = arith.addf %180, %182 : vector<16x32xf32>
    %cst_67 = arith.constant 0.000000e+00 : f32
    %184 = vector.broadcast %cst_67 : f32 to vector<16x32xf32>
    %185 = arith.maximumf %183, %184 : vector<16x32xf32>
    %c0_68 = arith.constant 0 : index
    %c0_69 = arith.constant 0 : index
    %186 = vector.load %arg10[%c0_68, %c0_69] : memref<32x128xf32, #tpu.memory_space<vmem>>, vector<32x128xf32>
    %cst_70 = arith.constant dense<0.000000e+00> : vector<16x128xf32>
    %187 = tpu.matmul %185, %186, %cst_70 {dimension_numbers = #tpu.dot_dimension_numbers<[1], [0], [0], [1], [0, 0, 1, 1], [], []>} : vector<16x32xf32>, vector<32x128xf32>, vector<16x128xf32> -> vector<16x128xf32>
    %c0_71 = arith.constant 0 : index
    %c0_72 = arith.constant 0 : index
    %188 = vector.load %arg11[%c0_71, %c0_72] : memref<1x128xf32, #tpu.memory_space<vmem>>, vector<1x128xf32>
    %189 = vector.broadcast %188 : vector<1x128xf32> to vector<16x128xf32>
    %190 = arith.addf %187, %189 : vector<16x128xf32>
    %cst_73 = arith.constant 0.000000e+00 : f32
    %191 = vector.broadcast %cst_73 : f32 to vector<16x128xf32>
    %192 = arith.maximumf %190, %191 : vector<16x128xf32>
    %c0_74 = arith.constant 0 : index
    %c0_75 = arith.constant 0 : index
    %193 = vector.load %arg12[%c0_74, %c0_75] : memref<16x128xf32, #tpu.memory_space<vmem>>, vector<16x128xf32>
    tpu.vector_store %arg12[%c0_74, %c0_75], %192 {strides = array<i32>} : memref<16x128xf32, #tpu.memory_space<vmem>>, vector<16x128xf32>,
    return
  }
  func.func @transform_0(%arg0: i32) -> (i32, i32) {
    %c0_i32 = arith.constant 0 : i32
    %c0_i32_0 = arith.constant 0 : i32
    return %arg0, %c0_i32 : i32, i32
  }
  func.func @transform_1(%arg0: i32) -> (i32, i32) {
    %c0_i32 = arith.constant 0 : i32
    %c0_i32_0 = arith.constant 0 : i32
    %c0_i32_1 = arith.constant 0 : i32
    return %c0_i32, %c0_i32_0 : i32, i32
  }
  func.func @transform_2(%arg0: i32) -> (i32, i32) {
    %c0_i32 = arith.constant 0 : i32
    %c0_i32_0 = arith.constant 0 : i32
    %c0_i32_1 = arith.constant 0 : i32
    return %c0_i32, %c0_i32_0 : i32, i32
  }
  func.func @transform_3(%arg0: i32) -> (i32, i32) {
    %c0_i32 = arith.constant 0 : i32
    %c0_i32_0 = arith.constant 0 : i32
    %c0_i32_1 = arith.constant 0 : i32
    return %c0_i32, %c0_i32_0 : i32, i32
  }
  func.func @transform_4(%arg0: i32) -> (i32, i32) {
    %c0_i32 = arith.constant 0 : i32
    %c0_i32_0 = arith.constant 0 : i32
    %c0_i32_1 = arith.constant 0 : i32
    return %c0_i32, %c0_i32_0 : i32, i32
  }
  func.func @transform_5(%arg0: i32) -> (i32, i32) {
    %c0_i32 = arith.constant 0 : i32
    %c0_i32_0 = arith.constant 0 : i32
    %c0_i32_1 = arith.constant 0 : i32
    return %c0_i32, %c0_i32_0 : i32, i32
  }
  func.func @transform_6(%arg0: i32) -> (i32, i32) {
    %c0_i32 = arith.constant 0 : i32
    %c0_i32_0 = arith.constant 0 : i32
    %c0_i32_1 = arith.constant 0 : i32
    return %c0_i32, %c0_i32_0 : i32, i32
  }
  func.func @transform_7(%arg0: i32) -> (i32, i32) {
    %c0_i32 = arith.constant 0 : i32
    %c0_i32_0 = arith.constant 0 : i32
    %c0_i32_1 = arith.constant 0 : i32
    return %c0_i32, %c0_i32_0 : i32, i32
  }
  func.func @transform_8(%arg0: i32) -> (i32, i32) {
    %c0_i32 = arith.constant 0 : i32
    %c0_i32_0 = arith.constant 0 : i32
    %c0_i32_1 = arith.constant 0 : i32
    return %c0_i32, %c0_i32_0 : i32, i32
  }
  func.func @transform_9(%arg0: i32) -> (i32, i32) {
    %c0_i32 = arith.constant 0 : i32
    %c0_i32_0 = arith.constant 0 : i32
    %c0_i32_1 = arith.constant 0 : i32
    return %c0_i32, %c0_i32_0 : i32, i32
  }
  func.func @transform_10(%arg0: i32) -> (i32, i32) {
    %c0_i32 = arith.constant 0 : i32
    %c0_i32_0 = arith.constant 0 : i32
    %c0_i32_1 = arith.constant 0 : i32
    return %c0_i32, %c0_i32_0 : i32, i32
  }
  func.func @transform_11(%arg0: i32) -> (i32, i32) {
    %c0_i32 = arith.constant 0 : i32
    %c0_i32_0 = arith.constant 0 : i32
    return %arg0, %c0_i32 : i32, i32
  }
}

</mosaic_0001>

<bundles_post_ra>
// kernel: tpu_custom_call.1
= control target key start
LH: loop header
LB: loop body
LE: loop exit
PB: predicated region body
PF: predicated region fallthrough
CT: control target
= control target key end

     0   :  { %16 = vsyncpa [#allocation3], 0  ;;  %s4919_s0 = inlined_call_operand.hbm [shape: f32[16,128], index: 0, kind: input, shape index: {}]   ;;  %s4920_s1 = inlined_call_operand.vmem [shape: f32[128,384], index: 1, kind: input, shape index: {}]   ;;  %s4921_s2 = inlined_call_operand.vmem [shape: f32[384,1], index: 2, kind: input, shape index: {}]   ;;  %s4922_s3 = inlined_call_operand.vmem [shape: f32[128,128], index: 3, kind: input, shape index: {}]   ;;  %s4923_s4 = inlined_call_operand.vmem [shape: f32[1,128], index: 4, kind: input, shape index: {}]   ;;  %s4924_s5 = inlined_call_operand.vmem [shape: f32[1,128], index: 5, kind: input, shape index: {}]   ;;  %s4925_s6 = inlined_call_operand.vmem [shape: f32[1,128], index: 6, kind: input, shape index: {}]   ;;  %s4926_s7 = inlined_call_operand.vmem [shape: f32[128,32], index: 7, kind: input, shape index: {}]   ;;  %s4927_s8 = inlined_call_operand.vmem [shape: f32[1,32], index: 8, kind: input, shape index: {}]   ;;  %s4928_s9 = inlined_call_operand.vmem [shape: f32[32,128], index: 9, kind: input, shape index: {}]   ;;  %s4929_s10 = inlined_call_operand.vmem [shape: f32[1,128], index: 10, kind: input, shape index: {}]   ;;  %s4930_s11 = inlined_call_operand.hbm [shape: f32[16,128], index: 11, kind: output, shape index: {}]  }
   0x1   :  { %17 = vsyncpa [#allocation4], 0  ;;  %s3838_s17 = smov [#allocation2]  }
   0x2   :  { %s23_s18 = sshll.u32 %s3838_s17, 4  ;;  %s24_s18 = int_to_ptr.vmem [resolvable:$true] %s23_s18 }
   0x3   :  { %s3802_s19 = scalar_lea.vmem %s24_s18, 256  ;;  %p3807_p1 = scmp.lt.s32.totalorder %s24_s18, %s24_s18 }
   0x4   :  { %p3803_p0 = scmp.ne.s32.totalorder %s24_s18, %s3802_s19  ;;  %p3808_p2 = scmp.lt.s32.totalorder %s3802_s19, %s3802_s19 }
   0x6   :  { %p3809_p3 = por %p3808_p2, %p3807_p1 }
   0x8   :  { %p3810_p4 = pnand %p3809_p3, %p3803_p0 }
   0xa   :  { %3813 = shalt.err (!%p3810_p4)
}
   0xb   :  { %s3839_s20 = smov 128   ;;  %s3840_s21 = smov 8  }
   0xc   :  { %29 = dma.hbm_to_vmem [thread:$0]  %s4919_s0, 256, %s24_s18, [#allocation3], %s3839_s20, %s3839_s20, %s3840_s21  }
   0xd   :  { %3834 = dma.done.wait [#allocation3], 256  }
   0xe   :  { %3835 = vsyncadd [#allocation3], 4294967040  ;;  %v55_v0 = vld [vmem:[%s4920_s1] sm:$0xff]  ;;  %v58_v1 = vld [vmem:[%s4920_s1 + $0x18] sm:$0xff]  ;;  %v3841_v35 = vmov 0   ;;  %vm3843_vm0 = vmmov 0  }
   0xf   :  { %391 = vxpose.xlu0.b32.start [1/16] %v55_v0, 128  ;;  %v56_v2 = vld [vmem:[%s4920_s1 + $0x8] sm:$0xff]  ;;  %v61_v3 = vld [vmem:[%s4920_s1 + $0x30] sm:$0xff]  ;;  %v59_v4 = vld [vmem:[%s4920_s1 + $0x20] sm:$0xff]  ;;  %vm824_vm1 = vcmask 261120   ;;  %vm899_vm2 = vcmask 64512   ;;  %s3844_s12 = smov 120  }
  0x10   :  { %423 = vxpose.xlu1.b32.start [1/16] %v56_v2, 128  ;;  %v64_v5 = vld [vmem:[%s4920_s1 + $0x48] sm:$0xff]  ;;  %v62_v6 = vld [vmem:[%s4920_s1 + $0x38] sm:$0xff]  ;;  %v53_v8 = vld [vmem:[#allocation2] sm:$0xff] }
  0x11   :  { %v54_v7 = vld [vmem:[#allocation2 + $0x8] sm:$0xff]  ;;  %v67_v9 = vld [vmem:[%s4920_s1 + $0x60] sm:$0xff]  ;;  %v65_v10 = vld [vmem:[%s4920_s1 + $0x50] sm:$0xff] }
  0x12   :  { %3402 = vmatprep.subr.mxu0 %v54_v7  ;;  %v70_v11 = vld [vmem:[%s4920_s1 + $0x78] sm:$0xff]  ;;  %v68_v12 = vld [vmem:[%s4920_s1 + $0x68] sm:$0xff]  ;;  %v73_v13 = vld [vmem:[%s4920_s1 + $0x90] sm:$0xff] }
  0x13   :  { %392 = vxpose.xlu0.b32.cont [2/16] %v58_v1, 128  ;;  %3403 = vmatpush3.xpose.msra.mxu0 %v54_v7  ;;  %v71_v14 = vld [vmem:[%s4920_s1 + $0x80] sm:$0xff]  ;;  %v76_v15 = vld [vmem:[%s4920_s1 + $0xa8] sm:$0xff]  ;;  %v74_v16 = vld [vmem:[%s4920_s1 + $0x98] sm:$0xff] }
  0x14   :  { %424 = vxpose.xlu1.b32.cont [2/16] %v59_v4, 128  ;;  %3404 = vmatprep.subr.mxu0 %v53_v8  ;;  %v79_v17 = vld [vmem:[%s4920_s1 + $0xc0] sm:$0xff]  ;;  %v77_v18 = vld [vmem:[%s4920_s1 + $0xb0] sm:$0xff]  ;;  %v82_v19 = vld [vmem:[%s4920_s1 + $0xd8] sm:$0xff] }
  0x15   :  { %v80_v20 = vld [vmem:[%s4920_s1 + $0xc8] sm:$0xff]  ;;  %v85_v21 = vld [vmem:[%s4920_s1 + $0xf0] sm:$0xff]  ;;  %v83_v22 = vld [vmem:[%s4920_s1 + $0xe0] sm:$0xff] }
  0x16   :  { %v88_v23 = vld [vmem:[%s4920_s1 + $0x108] sm:$0xff]  ;;  %v86_v24 = vld [vmem:[%s4920_s1 + $0xf8] sm:$0xff]  ;;  %v91_v25 = vld [vmem:[%s4920_s1 + $0x120] sm:$0xff] }
  0x17   :  { %393 = vxpose.xlu0.b32.cont [3/16] %v61_v3, 128  ;;  %3405 = vmatpush3.xpose.msra.mxu0 %v53_v8  ;;  %v89_v26 = vld [vmem:[%s4920_s1 + $0x110] sm:$0xff]  ;;  %v94_v27 = vld [vmem:[%s4920_s1 + $0x138] sm:$0xff]  ;;  %v92_v28 = vld [vmem:[%s4920_s1 + $0x128] sm:$0xff] }
  0x18   :  { %425 = vxpose.xlu1.b32.cont [3/16] %v62_v6, 128  ;;  %v97_v29 = vld [vmem:[%s4920_s1 + $0x150] sm:$0xff]  ;;  %v95_v30 = vld [vmem:[%s4920_s1 + $0x140] sm:$0xff]  ;;  %v100_v31 = vld [vmem:[%s4920_s1 + $0x168] sm:$0xff] }
  0x19   :  { %v98_v32 = vld [vmem:[%s4920_s1 + $0x158] sm:$0xff]  ;;  %v101_v33 = vld [vmem:[%s4920_s1 + $0x170] sm:$0xff]  ;;  %v104_v34 = vld [vmem:[%s4921_s2 + $0x8] sm:$0xff] }
  0x1a   :  { %v105_v36 = vld [vmem:[%s4921_s2 + $0x10] sm:$0xff]  ;;  %v103_v37 = vld [vmem:[%s4921_s2] sm:$0xff]  ;;  %v106_v38 = vld [vmem:[%s4921_s2 + $0x18] sm:$0xff] }
  0x1b   :  { %394 = vxpose.xlu0.b32.cont [4/16] %v64_v5, 128  ;;  %v121_v39 = vld [vmem:[%s4921_s2 + $0x90] sm:$0xff]  ;;  %v122_v40 = vld [vmem:[%s4921_s2 + $0x98] sm:$0xff]  ;;  %v119_v41 = vld [vmem:[%s4921_s2 + $0x80] sm:$0xff] }
  0x1c   :  { %426 = vxpose.xlu1.b32.cont [4/16] %v65_v10, 128  ;;  %v120_v42 = vld [vmem:[%s4921_s2 + $0x88] sm:$0xff]  ;;  %v57_v49 = vld [vmem:[%s4920_s1 + $0x10] sm:$0xff]  ;;  %v63_v55 = vld [vmem:[%s4920_s1 + $0x40] sm:$0xff] }
  0x1d   :  { %v60_v52 = vld [vmem:[%s4920_s1 + $0x28] sm:$0xff]  ;;  %v66_v57 = vld [vmem:[%s4920_s1 + $0x58] sm:$0xff]  ;;  %v69_v60 = vld [vmem:[%s4920_s1 + $0x70] sm:$0xff] }
  0x1e   :  { %v72_v63 = vld [vmem:[%s4920_s1 + $0x88] sm:$0xff]  ;;  %v75_v1 = vld [vmem:[%s4920_s1 + $0xa0] sm:$0xff]  ;;  %v78_v4 = vld [vmem:[%s4920_s1 + $0xb8] sm:$0xff] }
  0x1f   :  { %395 = vxpose.xlu0.b32.cont [5/16] %v67_v9, 128  ;;  %v81_v7 = vld [vmem:[%s4920_s1 + $0xd0] sm:$0xff]  ;;  %v84_v10 = vld [vmem:[%s4920_s1 + $0xe8] sm:$0xff] }
  0x20   :  { %427 = vxpose.xlu1.b32.cont [5/16] %v68_v12, 128  ;;  %v87_v12 = vld [vmem:[%s4920_s1 + $0x100] sm:$0xff] }
  0x23   :  { %396 = vxpose.xlu0.b32.cont [6/16] %v70_v11, 128 }
  0x24   :  { %428 = vxpose.xlu1.b32.cont [6/16] %v71_v14, 128 }
  0x27   :  { %397 = vxpose.xlu0.b32.cont [7/16] %v73_v13, 128 }
  0x28   :  { %429 = vxpose.xlu1.b32.cont [7/16] %v74_v16, 128 }
  0x2b   :  { %398 = vxpose.xlu0.b32.cont [8/16] %v76_v15, 128  ;;  %v90_v15 = vld [vmem:[%s4920_s1 + $0x118] sm:$0xff] }
  0x2c   :  { %430 = vxpose.xlu1.b32.cont [8/16] %v77_v18, 128  ;;  %v93_v18 = vld [vmem:[%s4920_s1 + $0x130] sm:$0xff] }
  0x2f   :  { %399 = vxpose.xlu0.b32.cont [9/16] %v79_v17, 128 }
  0x30   :  { %431 = vxpose.xlu1.b32.cont [9/16] %v80_v20, 128 }
  0x33   :  { %400 = vxpose.xlu0.b32.cont [10/16] %v82_v19, 128  ;;  %v96_v19 = vld [vmem:[%s4920_s1 + $0x148] sm:$0xff] }
  0x34   :  { %432 = vxpose.xlu1.b32.cont [10/16] %v83_v22, 128 }
  0x37   :  { %401 = vxpose.xlu0.b32.cont [11/16] %v85_v21, 128  ;;  %v99_v21 = vld [vmem:[%s4920_s1 + $0x160] sm:$0xff] }
  0x38   :  { %433 = vxpose.xlu1.b32.cont [11/16] %v86_v24, 128 }
  0x3b   :  { %402 = vxpose.xlu0.b32.cont [12/16] %v88_v23, 128  ;;  %v102_v23 = vld [vmem:[%s4920_s1 + $0x178] sm:$0xff] }
  0x3c   :  { %434 = vxpose.xlu1.b32.cont [12/16] %v89_v26, 128 }
  0x3f   :  { %403 = vxpose.xlu0.b32.cont [13/16] %v91_v25, 128 }
  0x40   :  { %435 = vxpose.xlu1.b32.cont [13/16] %v92_v28, 128  ;;  %v135_v28 = vld [vmem:[%s4921_s2 + $0x100] sm:$0xff] }
  0x43   :  { %404 = vxpose.xlu0.b32.cont [14/16] %v94_v27, 128  ;;  %v108_v27 = vld [vmem:[%s4921_s2 + $0x28] sm:$0xff] }
  0x44   :  { %436 = vxpose.xlu1.b32.cont [14/16] %v95_v30, 128 }
  0x47   :  { %405 = vxpose.xlu0.b32.cont [15/16] %v97_v29, 128  ;;  %v136_v29 = vld [vmem:[%s4921_s2 + $0x108] sm:$0xff] }
  0x48   :  { %437 = vxpose.xlu1.b32.cont [15/16] %v98_v32, 128 }
  0x4b   :  { %406 = vxpose.xlu0.b32.end [16/16] %v100_v31, 128  ;;  %v126_v31 = vld [vmem:[%s4921_s2 + $0xb8] sm:$0xff] }
  0x4c   :  { %438 = vxpose.xlu1.b32.end [16/16] %v101_v33, 128  ;;  %v125_v33 = vld [vmem:[%s4921_s2 + $0xb0] sm:$0xff] }
  0x6a   :  { %3755 = vset.pattern.permute.xlu1 %v3841_v35 }
  0x6b   :  { %158 = vperm.xlu1 %3755, %v104_v34  }
  0x6f   :  { %163 = vperm.xlu1 %3755, %v105_v36   ;;  %v3842_v36 = vmov 0.0  }
  0x70   :  { %3478 = vmatprep.subr.mxu1 %v3842_v36  ;;  %3486 = vmatprep.mubr.msk.f32.mxu1 %vm3843_vm0, %v3842_v36 }
  0x73   :  { %168 = vperm.xlu1 %3755, %v106_v38  }
  0x74   :  { %3754 = vset.pattern.permute.xlu0 %v3841_v35  ;;  %v137_v35 = vld [vmem:[%s4921_s2 + $0x110] sm:$0xff] }
  0x75   :  { %153 = vperm.xlu0 %3754, %v103_v37   ;;  %v124_v37 = vld [vmem:[%s4921_s2 + $0xa8] sm:$0xff] }
  0x77   :  { %248 = vperm.xlu1 %3755, %v122_v40  }
  0x79   :  { %243 = vperm.xlu0 %3754, %v121_v39   ;;  %v123_v39 = vld [vmem:[%s4921_s2 + $0xa0] sm:$0xff] }
  0x7b   :  { %238 = vperm.xlu1 %3755, %v120_v42  }
  0x7d   :  { %233 = vperm.xlu0 %3754, %v119_v41  }
  0x8b   :  { %v407_v43 = vpop.trf.xlu0 }
  0x8c   :  { %3406 = vmatprep.mubr.f32.mxu0 %v407_v43  ;;  %v4032_v45 = vpop.trf.xlu1 }
  0x8f   :  { %v408_v44 = vpop.trf.xlu0 }
  0x90   :  { %3407 = vmatmul.mubr.f32.vlgmr.msra.gmra.mxu0 %v408_v44  ;;  %v4034_v47 = vpop.trf.xlu1 }
  0x93   :  { %v409_v46 = vpop.trf.xlu0 }
  0x94   :  { %3409 = vmatprep.mubr.f32.mxu0 %v409_v46  ;;  %v441_v50 = vpop.trf.xlu1 }
  0x97   :  { %v410_v48 = vpop.trf.xlu0 }
  0x98   :  { %3410 = vmatmul.mubr.f32.gmra.mxu0 %v410_v48  ;;  %v442_v54 = vpop.trf.xlu1 }
  0x9b   :  { %455 = vxpose.xlu0.b32.start [1/16] %v57_v49, 128  ;;  %v411_v51 = vpop.trf.xlu0 }
  0x9c   :  { %3412 = vmatprep.mubr.f32.mxu0 %v411_v51  ;;  %v443_v58 = vpop.trf.xlu1 }
  0x9f   :  { %456 = vxpose.xlu0.b32.cont [2/16] %v60_v52, 128  ;;  %v412_v53 = vpop.trf.xlu0 }
  0xa0   :  { %3413 = vmatmul.mubr.f32.gmra.mxu0 %v412_v53  ;;  %v444_v62 = vpop.trf.xlu1 }
  0xa3   :  { %457 = vxpose.xlu0.b32.cont [3/16] %v63_v55, 128  ;;  %v413_v56 = vpop.trf.xlu0 }
  0xa4   :  { %3415 = vmatprep.mubr.f32.mxu0 %v413_v56  ;;  %v445_v2 = vpop.trf.xlu1 }
  0xa7   :  { %458 = vxpose.xlu0.b32.cont [4/16] %v66_v57, 128  ;;  %v414_v59 = vpop.trf.xlu0 }
  0xa8   :  { %3416 = vmatmul.mubr.f32.gmra.mxu0 %v414_v59  ;;  %v446_v6 = vpop.trf.xlu1 }
  0xab   :  { %459 = vxpose.xlu0.b32.cont [5/16] %v69_v60, 128  ;;  %v415_v61 = vpop.trf.xlu0 }
  0xac   :  { %3418 = vmatprep.mubr.f32.mxu0 %v415_v61  ;;  %v447_v9 = vpop.trf.xlu1 }
  0xaf   :  { %460 = vxpose.xlu0.b32.cont [6/16] %v72_v63, 128  ;;  %v416_v0 = vpop.trf.xlu0 }
  0xb0   :  { %3419 = vmatmul.mubr.f32.gmra.mxu0 %v416_v0  ;;  %v448_v13 = vpop.trf.xlu1 }
  0xb3   :  { %461 = vxpose.xlu0.b32.cont [7/16] %v75_v1, 128  ;;  %v417_v3 = vpop.trf.xlu0 }
  0xb4   :  { %3421 = vmatprep.mubr.f32.mxu0 %v417_v3  ;;  %v449_v17 = vpop.trf.xlu1 }
  0xb7   :  { %462 = vxpose.xlu0.b32.cont [8/16] %v78_v4, 128  ;;  %v418_v5 = vpop.trf.xlu0 }
  0xb8   :  { %3422 = vmatmul.mubr.f32.gmra.mxu0 %v418_v5  ;;  %v450_v20 = vpop.trf.xlu1 }
  0xbb   :  { %463 = vxpose.xlu0.b32.cont [9/16] %v81_v7, 128  ;;  %v419_v8 = vpop.trf.xlu0 }
  0xbc   :  { %3424 = vmatprep.mubr.f32.mxu0 %v419_v8  ;;  %v451_v22 = vpop.trf.xlu1 }
  0xbf   :  { %464 = vxpose.xlu0.b32.cont [10/16] %v84_v10, 128  ;;  %v420_v11 = vpop.trf.xlu0 }
  0xc0   :  { %3425 = vmatmul.mubr.f32.gmra.mxu0 %v420_v11  ;;  %v452_v24 = vpop.trf.xlu1 }
  0xc3   :  { %465 = vxpose.xlu0.b32.cont [11/16] %v87_v12, 128  ;;  %v421_v14 = vpop.trf.xlu0 }
  0xc4   :  { %3427 = vmatprep.mubr.f32.mxu0 %v421_v14  ;;  %v453_v25 = vpop.trf.xlu1 }
  0xc7   :  { %466 = vxpose.xlu0.b32.cont [12/16] %v90_v15, 128  ;;  %v422_v16 = vpop.trf.xlu0 }
  0xc8   :  { %3428 = vmatmul.mubr.f32.gmra.mxu0 %v422_v16  ;;  %v454_v26 = vpop.trf.xlu1 }
  0xc9   :  { %3430 = vmatprep.mubr.f32.mxu0 %v4032_v45 }
  0xcb   :  { %467 = vxpose.xlu0.b32.cont [13/16] %v93_v18, 128 }
  0xcc   :  { %3431 = vmatmul.mubr.f32.gmra.mxu0 %v4034_v47 }
  0xcd   :  { %3433 = vmatprep.mubr.f32.mxu0 %v441_v50 }
  0xcf   :  { %468 = vxpose.xlu0.b32.cont [14/16] %v96_v19, 128 }
  0xd0   :  { %3434 = vmatmul.mubr.f32.gmra.mxu0 %v442_v54 }
  0xd1   :  { %3436 = vmatprep.mubr.f32.mxu0 %v443_v58 }
  0xd3   :  { %469 = vxpose.xlu0.b32.cont [15/16] %v99_v21, 128 }
  0xd4   :  { %3437 = vmatmul.mubr.f32.gmra.mxu0 %v444_v62 }
  0xd5   :  { %3439 = vmatprep.mubr.f32.mxu0 %v445_v2 }
  0xd7   :  { %470 = vxpose.xlu0.b32.end [16/16] %v102_v23, 128 }
  0xd8   :  { %3440 = vmatmul.mubr.f32.gmra.mxu0 %v446_v6 }
  0xd9   :  { %3442 = vmatprep.mubr.f32.mxu0 %v447_v9 }
  0xdc   :  { %3443 = vmatmul.mubr.f32.gmra.mxu0 %v448_v13 }
  0xdd   :  { %3445 = vmatprep.mubr.f32.mxu0 %v449_v17 }
  0xe0   :  { %3446 = vmatmul.mubr.f32.gmra.mxu0 %v450_v20 }
  0xe1   :  { %3448 = vmatprep.mubr.f32.mxu0 %v451_v22 }
  0xe4   :  { %3449 = vmatmul.mubr.f32.gmra.mxu0 %v452_v24 }
  0xe5   :  { %3451 = vmatprep.mubr.f32.mxu0 %v453_v25 }
  0xe6   :  { %v159_v55 = vpop.permute.xlu1 %158 }
  0xe8   :  { %3452 = vmatmul.mubr.f32.gmra.mxu0 %v454_v26 }
  0xea   :  { %v164_v60 = vpop.permute.xlu1 %163 }
  0xee   :  { %v169_v0 = vpop.permute.xlu1 %168 }
  0xf0   :  { %v154_v30 = vpop.permute.xlu0 %153 }
  0xf2   :  { %v249_v15 = vpop.permute.xlu1 %248 }
  0xf4   :  { %v4098_v32 = vpop.permute.xlu0 %243 }
  0xf6   :  { %v239_v21 = vpop.permute.xlu1 %238 }
  0xf8   :  { %v4103_v34 = vpop.permute.xlu0 %233 }
 0x100   :  { %178 = vperm.xlu0 %3754, %v108_v27  }
 0x104   :  { %313 = vperm.xlu0 %3754, %v135_v28  }
 0x108   :  { %318 = vperm.xlu0 %3754, %v136_v29  }
 0x10c   :  { %268 = vperm.xlu0 %3754, %v126_v31  }
 0x110   :  { %263 = vperm.xlu0 %3754, %v125_v33  }
 0x114   :  { %323 = vperm.xlu0 %3754, %v137_v35  }
 0x117   :  { %v471_v38 = vpop.trf.xlu0 }
 0x118   :  { %258 = vperm.xlu0 %3754, %v124_v37   ;;  %3454 = vmatprep.mubr.f32.mxu0 %v471_v38 }
 0x11b   :  { %v472_v40 = vpop.trf.xlu0 }
 0x11c   :  { %253 = vperm.xlu0 %3754, %v123_v39   ;;  %3455 = vmatmul.mubr.f32.gmra.mxu0 %v472_v40 }
 0x11f   :  { %v473_v41 = vpop.trf.xlu0 }
 0x120   :  { %3457 = vmatprep.mubr.f32.mxu0 %v473_v41 }
 0x123   :  { %v474_v42 = vpop.trf.xlu0 }
 0x124   :  { %3458 = vmatmul.mubr.f32.gmra.mxu0 %v474_v42 }
 0x127   :  { %v475_v43 = vpop.trf.xlu0 }
 0x128   :  { %3460 = vmatprep.mubr.f32.mxu0 %v475_v43 }
 0x12b   :  { %v476_v44 = vpop.trf.xlu0 }
 0x12c   :  { %3461 = vmatmul.mubr.f32.gmra.mxu0 %v476_v44 }
 0x12f   :  { %v477_v45 = vpop.trf.xlu0 }
 0x130   :  { %3463 = vmatprep.mubr.f32.mxu0 %v477_v45 }
 0x133   :  { %v478_v46 = vpop.trf.xlu0 }
 0x134   :  { %3464 = vmatmul.mubr.f32.gmra.mxu0 %v478_v46 }
 0x137   :  { %v479_v47 = vpop.trf.xlu0 }
 0x138   :  { %3466 = vmatprep.mubr.f32.mxu0 %v479_v47  ;;  %v107_v47 = vld [vmem:[%s4921_s2 + $0x20] sm:$0xff] }
 0x13b   :  { %v480_v48 = vpop.trf.xlu0 }
 0x13c   :  { %3467 = vmatmul.mubr.f32.gmra.mxu0 %v480_v48  ;;  %v109_v48 = vld [vmem:[%s4921_s2 + $0x30] sm:$0xff] }
 0x13f   :  { %v481_v49 = vpop.trf.xlu0 }
 0x140   :  { %3469 = vmatprep.mubr.f32.mxu0 %v481_v49  ;;  %v110_v49 = vld [vmem:[%s4921_s2 + $0x38] sm:$0xff] }
 0x143   :  { %v482_v50 = vpop.trf.xlu0 }
 0x144   :  { %3470 = vmatmul.mubr.f32.gmra.mxu0 %v482_v50 }
 0x147   :  { %v483_v51 = vpop.trf.xlu0 }
 0x148   :  { %3472 = vmatprep.mubr.f32.mxu0 %v483_v51 }
 0x14b   :  { %v484_v52 = vpop.trf.xlu0 }
 0x14c   :  { %3473 = vmatmul.mubr.f32.gmra.mxu0 %v484_v52 }
 0x14f   :  { %v485_v53 = vpop.trf.xlu0 }
 0x150   :  { %v3408_v54 = vpop.f32.mrf.mxu0  ;;  %3475 = vmatprep.mubr.f32.mxu0 %v485_v53 }
 0x151   :  { %v4120_v59 = vadd.f32 %v3408_v54, %v159_v55 }
 0x152   :  { %v553_v56 = vpop.f32.mrf.mxu0 }
 0x153   :  { %v4117_v57 = vadd.f32 %v553_v56, %v154_v30  ;;  %v486_v58 = vpop.trf.xlu0 }
 0x154   :  { %3476 = vmatmul.mubr.f32.gmra.mxu0 %v486_v58 }
 0x155   :  { %792 = vxpose.xlu1.b32.start [1/4] (short) (narrow) %v4117_v57, 8 }
 0x158   :  { %v3411_v61 = vpop.f32.mrf.mxu0 }
 0x159   :  { %793 = vxpose.xlu1.b32.cont [2/4] (short) (narrow) %v4120_v59, 8  ;;  %v4126_v1 = vadd.f32 %v3411_v61, %v169_v0 }
 0x15a   :  { %v563_v62 = vpop.f32.mrf.mxu0 }
 0x15b   :  { %v4123_v63 = vadd.f32 %v563_v62, %v164_v60 }
 0x15d   :  { %794 = vxpose.xlu1.b32.cont [3/4] (short) (narrow) %v4123_v63, 8 }
 0x160   :  { %v4128_v2 = vpop.f32.mrf.mxu0 }
 0x161   :  { %795 = vxpose.xlu1.b32.end [4/4] (short) (narrow) %v4126_v1, 8 }
 0x162   :  { %v4131_v3 = vpop.f32.mrf.mxu0 }
 0x168   :  { %v4133_v4 = vpop.f32.mrf.mxu0 }
 0x16a   :  { %v4135_v5 = vpop.f32.mrf.mxu0 }
 0x170   :  { %v4137_v6 = vpop.f32.mrf.mxu0 }
 0x172   :  { %v4139_v7 = vpop.f32.mrf.mxu0 }
 0x178   :  { %v4141_v8 = vpop.f32.mrf.mxu0 }
 0x17a   :  { %v4143_v9 = vpop.f32.mrf.mxu0 }
 0x17b   :  { %v179_v37 = vpop.permute.xlu0 %178 }
 0x17c   :  { %v4216_v56 = vadd.f32 %v4128_v2, %v179_v37  ;;  %v138_v2 = vld [vmem:[%s4921_s2 + $0x118] sm:$0xff] }
 0x17f   :  { %v314_v40 = vpop.permute.xlu0 %313 }
 0x180   :  { %v4145_v10 = vpop.f32.mrf.mxu0 }
 0x182   :  { %v4147_v11 = vpop.f32.mrf.mxu0 }
 0x188   :  { %v4149_v12 = vpop.f32.mrf.mxu0 }
 0x18a   :  { %v4151_v13 = vpop.f32.mrf.mxu0 }
 0x18c   :  { %v3432_v14 = vpop.f32.mrf.mxu0 }
 0x18d   :  { %v4160_v22 = vadd.f32 %v3432_v14, %v239_v21  ;;  %v130_v14 = vld [vmem:[%s4921_s2 + $0xd8] sm:$0xff]  ;;  %v319_v21 = vpop.permute.xlu0 %318 }
 0x18e   :  { %v633_v16 = vpop.f32.mrf.mxu0 }
 0x18f   :  { %v4165_v23 = vadd.f32 %v633_v16, %v4103_v34  ;;  %v141_v16 = vld [vmem:[%s4921_s2 + $0x130] sm:$0xff] }
 0x190   :  { %v3435_v17 = vpop.f32.mrf.mxu0 }
 0x191   :  { %v4153_v18 = vadd.f32 %v3435_v17, %v249_v15  ;;  %v129_v15 = vld [vmem:[%s4921_s2 + $0xd0] sm:$0xff]  ;;  %v142_v17 = vld [vmem:[%s4921_s2 + $0x138] sm:$0xff] }
 0x192   :  { %v643_v19 = vpop.f32.mrf.mxu0 }
 0x193   :  { %v4156_v20 = vadd.f32 %v643_v19, %v4098_v32  ;;  %3479 = vmatpush3.msra.mxu1 %v4153_v18  ;;  %v127_v19 = vld [vmem:[%s4921_s2 + $0xc0] sm:$0xff] }
 0x194   :  { %3480 = vmatprep.subr.mxu1 %v3842_v36  ;;  %v4170_v24 = vpop.f32.mrf.mxu0 }
 0x195   :  { %3481 = vmatpush3.msra.mxu1 %v4156_v20 }
 0x196   :  { %3482 = vmatprep.subr.mxu1 %v3842_v36  ;;  %v4172_v25 = vpop.f32.mrf.mxu0 }
 0x197   :  { %3483 = vmatpush3.msra.mxu1 %v4160_v22 }
 0x198   :  { %3484 = vmatprep.subr.mxu1 %v3842_v36  ;;  %v4174_v26 = vpop.f32.mrf.mxu0 }
 0x199   :  { %3485 = vmatpush3.msra.mxu1 %v4165_v23 }
 0x19a   :  { %v4176_v27 = vpop.f32.mrf.mxu0 }
 0x19c   :  { %v4178_v28 = vpop.f32.mrf.mxu0 }
 0x19e   :  { %v4180_v29 = vpop.f32.mrf.mxu0 }
 0x1a0   :  { %v4182_v30 = vpop.f32.mrf.mxu0 }
 0x1a2   :  { %v4184_v31 = vpop.f32.mrf.mxu0 }
 0x1a4   :  { %v4186_v32 = vpop.f32.mrf.mxu0 }
 0x1a6   :  { %v4188_v33 = vpop.f32.mrf.mxu0 }
 0x1a8   :  { %v4191_v35 = vpop.f32.mrf.mxu0 }
 0x1aa   :  { %v4193_v38 = vpop.f32.mrf.mxu0 }
 0x1d1   :  { %v808_v34 = vpop.trf.xlu1 }
 0x1d2   :  { %3487 = vmatmul.mubr.msk.f32.vlgmr.msra.gmra.mxu1 %vm824_vm1, %v808_v34  ;;  %v269_v34 = vpop.permute.xlu0 %268 }
 0x1d6   :  { %v264_v37 = vpop.permute.xlu0 %263 }
 0x1dc   :  { %v4195_v39 = vpop.f32.mrf.mxu0 }
 0x1de   :  { %v713_v41 = vpop.f32.mrf.mxu0 }
 0x1df   :  { %v4197_v42 = vadd.f32 %v713_v41, %v314_v40  ;;  %v324_v41 = vpop.permute.xlu0 %323 }
 0x1e1   :  { %3491 = vmatprep.mubr.msk.f32.mxu1 %vm899_vm2, %v4197_v42 }
 0x292   :  { %v894_v43 = vpop.f32.mrf.mxu1 }
 0x293   :  { %v898_v44 = vmul.f32 0.17677669, %v894_v43  ;;  %v259_v43 = vpop.permute.xlu0 %258 }
 0x294   :  { %v3488_v45 = vpop.f32.mrf.mxu1 }
 0x295   :  { %v900_v46 = vsel %vm899_vm2, %v898_v44, -inf }
 0x296   :  { %901 = vmax.xlane.f32.xlu1 %v900_v46 }
 0x2a7   :  { %173 = vperm.xlu1 %3755, %v107_v47   ;;  %v254_v47 = vpop.permute.xlu0 %253 }
 0x2ab   :  { %183 = vperm.xlu1 %3755, %v109_v48  }
 0x2af   :  { %188 = vperm.xlu1 %3755, %v110_v49   ;;  %v4258_v49 = vadd.f32 %v4195_v39, %v319_v21  ;;  %v113_v21 = vld [vmem:[%s4921_s2 + $0x50] sm:$0xff] }
 0x31f   :  { %v902_v50 = vpop.xlane.xlu1 %901 }
 0x320   :  { %v903_v51 = vsub.f32 %v898_v44, %v902_v50  ;;  %v3459_v44 = vpop.f32.mrf.mxu0  ;;  %v4262_v50 = vadd.f32 %v4174_v26, %v269_v34  ;;  %v4278_v26 = vadd.f32 %v4170_v24, %v259_v43  ;;  %v114_v34 = vld [vmem:[%s4921_s2 + $0x58] sm:$0xff] }
 0x322   :  { %v904_v52 = vmul.f32 1.442695, %v903_v51  ;;  %v723_v48 = vpop.f32.mrf.mxu0 }
 0x323   :  { %v174_v53 = vpop.permute.xlu1 %173  ;;  %v4264_v51 = vadd.f32 %v723_v48, %v324_v41 }
 0x324   :  { %3756 = vpow2.f32 %v904_v52  ;;  %v4212_v54 = vadd.f32 %v4131_v3, %v174_v53  ;;  %v111_v3 = vld [vmem:[%s4921_s2 + $0x40] sm:$0xff] }
 0x326   :  { %1011 = vxpose.xlu0.b32.start [1/4] (short) (narrow) %v4212_v54, 8 }
 0x327   :  { %v184_v55 = vpop.permute.xlu1 %183 }
 0x328   :  { %v4220_v58 = vadd.f32 %v4135_v5, %v184_v55  ;;  %v140_v5 = vld [vmem:[%s4921_s2 + $0x128] sm:$0xff]  ;;  %v4269_v55 = vadd.f32 %v4176_v27, %v264_v37  ;;  %v4287_v27 = vadd.f32 %v4172_v25, %v254_v47 }
 0x32a   :  { %1012 = vxpose.xlu0.b32.cont [2/4] (short) (narrow) %v4216_v56, 8 }
 0x32b   :  { %v189_v60 = vpop.permute.xlu1 %188 }
 0x32c   :  { %v4224_v61 = vadd.f32 %v4133_v4, %v189_v60  ;;  %v139_v4 = vld [vmem:[%s4921_s2 + $0x120] sm:$0xff]  ;;  %v4281_v60 = vpop.f32.mrf.mxu0 }
 0x32e   :  { %1013 = vxpose.xlu0.b32.cont [3/4] (short) (narrow) %v4220_v58, 8 }
 0x331   :  { %v3757_v62 = vpop.eup %3756 }
 0x332   :  { %1014 = vxpose.xlu0.b32.end [4/4] (short) (narrow) %v4224_v61, 8  ;;  %v906_v0 = vsel %vm899_vm2, %v3757_v62, 0.0 }
 0x333   :  { %907 = vadd.xlane.f32.xlu1 %v906_v0  ;;  %v733_v0 = vpop.f32.mrf.mxu0 }
 0x344   :  { %328 = vperm.xlu1 %3755, %v138_v2  }
 0x35b   :  { %193 = vperm.xlu0 %3754, %v111_v3  }
 0x35f   :  { %333 = vperm.xlu0 %3754, %v139_v4  }
 0x363   :  { %338 = vperm.xlu0 %3754, %v140_v5  }
 0x367   :  { %288 = vperm.xlu0 %3754, %v130_v14  }
 0x36b   :  { %283 = vperm.xlu0 %3754, %v129_v15  }
 0x36f   :  { %343 = vperm.xlu0 %3754, %v141_v16  }
 0x373   :  { %348 = vperm.xlu0 %3754, %v142_v17  }
 0x377   :  { %273 = vperm.xlu0 %3754, %v127_v19   ;;  %v112_v19 = vld [vmem:[%s4921_s2 + $0x48] sm:$0xff] }
 0x3a2   :  { %v1027_v53 = vpop.trf.xlu0 }
 0x3bc   :  { %v908_v40 = vpop.xlane.xlu1 %907 }
 0x3bd   :  { %3758 = vrcp.f32 %v908_v40 }
 0x3c0   :  { %v329_v52 = vpop.permute.xlu1 %328 }
 0x3c1   :  { %v4274_v39 = vadd.f32 %v3459_v44, %v329_v52 }
 0x3ca   :  { %v3759_v45 = vpop.eup %3758 }
 0x3cb   :  { %v910_v46 = vmul.f32 %v3759_v45, %v3757_v62 }
 0x3cd   :  { %3489 = vmatprep.subr.msk.mxu1 %vm899_vm2, %v910_v46 }
 0x3ce   :  { %3490 = vmatpush3.xpose.msk.msra.mxu1 %vm899_vm2, %v910_v46 }
 0x3cf   :  { %3497 = vmatprep.subr.mxu1 %v3842_v36 }
 0x3d1   :  { %3492 = vmatmul.mubr.msk.f32.vlgmr.msra.gmra.mxu1 %vm899_vm2, %v4258_v49 }
 0x3d2   :  { %3494 = vmatprep.mubr.msk.f32.mxu1 %vm899_vm2, %v4264_v51  ;;  %3498 = vmatpush3.msra.mxu1 %v4262_v50 }
 0x3d3   :  { %3499 = vmatprep.subr.mxu1 %v3842_v36 }
 0x3d4   :  { %3500 = vmatpush3.msra.mxu1 %v4269_v55 }
 0x3d5   :  { %3495 = vmatmul.mubr.msk.f32.gmra.mxu1 %vm899_vm2, %v4274_v39  ;;  %3501 = vmatprep.subr.mxu1 %v3842_v36 }
 0x3d6   :  { %v194_v62 = vpop.permute.xlu0 %193  ;;  %3502 = vmatpush3.msra.mxu1 %v4278_v26  ;;  %3505 = vmatprep.mubr.msk.f32.mxu1 %vm3843_vm0, %v3842_v36 }
 0x3d7   :  { %v4293_v24 = vadd.f32 %v4139_v7, %v194_v62  ;;  %3503 = vmatprep.subr.mxu1 %v3842_v36  ;;  %v144_v62 = vld [vmem:[%s4921_s2 + $0x148] sm:$0xff] }
 0x3d8   :  { %3504 = vmatpush3.msra.mxu1 %v4287_v27 }
 0x3d9   :  { %1228 = vxpose.xlu0.b32.start [1/4] (short) (narrow) %v4293_v24, 8  ;;  %3506 = vmatmul.mubr.msk.f32.vlgmr.msra.gmra.mxu1 %vm824_vm1, %v1027_v53 }
 0x3da   :  { %v334_v25 = vpop.permute.xlu0 %333 }
 0x3db   :  { %v4299_v2 = vadd.f32 %v733_v0, %v334_v25  ;;  %v134_v0 = vld [vmem:[%s4921_s2 + $0xf8] sm:$0xff]  ;;  %v133_v25 = vld [vmem:[%s4921_s2 + $0xf0] sm:$0xff] }
 0x3dd   :  { %3510 = vmatprep.mubr.msk.f32.mxu1 %vm899_vm2, %v4299_v2 }
 0x491   :  { %v4303_v3 = vpop.f32.mrf.mxu1 }
 0x493   :  { %v4305_v4 = vpop.f32.mrf.mxu1 }
 0x495   :  { %v4307_v7 = vpop.f32.mrf.mxu1 }
 0x497   :  { %v4309_v5 = vpop.f32.mrf.mxu1 }
 0x499   :  { %v1112_v14 = vpop.f32.mrf.mxu1 }
 0x49a   :  { %v1116_v15 = vmul.f32 0.17677669, %v1112_v14  ;;  %v145_v14 = vld [vmem:[%s4921_s2 + $0x150] sm:$0xff] }
 0x49b   :  { %v3507_v16 = vpop.f32.mrf.mxu1 }
 0x49c   :  { %v1117_v17 = vsel %vm899_vm2, %v1116_v15, -inf  ;;  %v132_v16 = vld [vmem:[%s4921_s2 + $0xe8] sm:$0xff] }
 0x49d   :  { %1118 = vmax.xlane.f32.xlu1 %v1117_v17  ;;  %v339_v17 = vpop.permute.xlu0 %338 }
 0x4ae   :  { %198 = vperm.xlu1 %3755, %v112_v19   ;;  %v289_v19 = vpop.permute.xlu0 %288 }
 0x4b2   :  { %203 = vperm.xlu1 %3755, %v113_v21   ;;  %v284_v21 = vpop.permute.xlu0 %283 }
 0x4b6   :  { %208 = vperm.xlu1 %3755, %v114_v34   ;;  %v344_v34 = vpop.permute.xlu0 %343 }
 0x526   :  { %v1119_v37 = vpop.xlane.xlu1 %1118 }
 0x527   :  { %v1120_v40 = vsub.f32 %v1116_v15, %v1119_v37  ;;  %v146_v15 = vld [vmem:[%s4921_s2 + $0x158] sm:$0xff] }
 0x529   :  { %v1121_v41 = vmul.f32 1.442695, %v1120_v40  ;;  %v349_v40 = vpop.permute.xlu0 %348 }
 0x52a   :  { %v199_v43 = vpop.permute.xlu1 %198 }
 0x52b   :  { %3760 = vpow2.f32 %v1121_v41  ;;  %v4322_v44 = vadd.f32 %v4137_v6, %v199_v43  ;;  %v128_v6 = vld [vmem:[%s4921_s2 + $0xc8] sm:$0xff]  ;;  %v3465_v43 = vpop.f32.mrf.mxu0 }
 0x52d   :  { %1229 = vxpose.xlu0.b32.cont [2/4] (short) (narrow) %v4322_v44, 8  ;;  %v274_v41 = vpop.permute.xlu0 %273 }
 0x52e   :  { %v204_v45 = vpop.permute.xlu1 %203 }
 0x52f   :  { %v4326_v46 = vadd.f32 %v4143_v9, %v204_v45  ;;  %v115_v9 = vld [vmem:[%s4921_s2 + $0x60] sm:$0xff] }
 0x531   :  { %1230 = vxpose.xlu0.b32.cont [3/4] (short) (narrow) %v4326_v46, 8 }
 0x532   :  { %v209_v47 = vpop.permute.xlu1 %208 }
 0x533   :  { %v4330_v48 = vadd.f32 %v4141_v8, %v209_v47  ;;  %v143_v8 = vld [vmem:[%s4921_s2 + $0x140] sm:$0xff] }
 0x535   :  { %1231 = vxpose.xlu0.b32.end [4/4] (short) (narrow) %v4330_v48, 8 }
 0x538   :  { %v3761_v52 = vpop.eup %3760 }
 0x539   :  { %v1123_v53 = vsel %vm899_vm2, %v3761_v52, 0.0 }
 0x53a   :  { %1124 = vadd.xlane.f32.xlu1 %v1123_v53 }
 0x54b   :  { %278 = vperm.xlu1 %3755, %v128_v6   ;;  %v743_v6 = vpop.f32.mrf.mxu0 }
 0x55e   :  { %213 = vperm.xlu0 %3754, %v115_v9   ;;  %v4364_v9 = vadd.f32 %v4281_v60, %v339_v17  ;;  %v4382_v60 = vadd.f32 %v3465_v43, %v349_v40  ;;  %v116_v43 = vld [vmem:[%s4921_s2 + $0x68] sm:$0xff] }
 0x560   :  { %4932 = vst [vmem:[#allocation8_spill] sm:$0xff] %v4382_v60 }
 0x562   :  { %353 = vperm.xlu0 %3754, %v143_v8   ;;  %v4368_v8 = vadd.f32 %v4182_v30, %v289_v19 }
 0x566   :  { %358 = vperm.xlu0 %3754, %v144_v62   ;;  %v4370_v62 = vadd.f32 %v743_v6, %v344_v34 }
 0x56a   :  { %308 = vperm.xlu0 %3754, %v134_v0   ;;  %v4372_v0 = vpop.f32.mrf.mxu0 }
 0x56e   :  { %303 = vperm.xlu0 %3754, %v133_v25  }
 0x572   :  { %363 = vperm.xlu0 %3754, %v145_v14  }
 0x576   :  { %368 = vperm.xlu0 %3754, %v146_v15  }
 0x57a   :  { %298 = vperm.xlu0 %3754, %v132_v16  }
 0x5a5   :  { %v1244_v53 = vpop.trf.xlu0 }
 0x5c3   :  { %v1125_v37 = vpop.xlane.xlu1 %1124 }
 0x5c4   :  { %3762 = vrcp.f32 %v1125_v37 }
 0x5c7   :  { %v279_v25 = vpop.permute.xlu1 %278 }
 0x5c8   :  { %v4390_v15 = vadd.f32 %v4178_v28, %v279_v25 }
 0x5d1   :  { %v3763_v45 = vpop.eup %3762 }
 0x5d2   :  { %v1127_v47 = vmul.f32 %v3763_v45, %v3761_v52  ;;  %v4377_v52 = vadd.f32 %v4184_v31, %v284_v21  ;;  %v753_v31 = vpop.f32.mrf.mxu0  ;;  %v117_v45 = vld [vmem:[%s4921_s2 + $0x70] sm:$0xff] }
 0x5d4   :  { %3508 = vmatprep.subr.msk.mxu1 %vm899_vm2, %v1127_v47 }
 0x5d5   :  { %3509 = vmatpush3.xpose.msk.msra.mxu1 %vm899_vm2, %v1127_v47  ;;  %v118_v47 = vld [vmem:[%s4921_s2 + $0x78] sm:$0xff] }
 0x5d6   :  { %3516 = vmatprep.subr.mxu1 %v3842_v36 }
 0x5d8   :  { %3511 = vmatmul.mubr.msk.f32.vlgmr.msra.gmra.mxu1 %vm899_vm2, %v4364_v9 }
 0x5d9   :  { %v214_v14 = vpop.permute.xlu0 %213  ;;  %3513 = vmatprep.mubr.msk.f32.mxu1 %vm899_vm2, %v4370_v62  ;;  %3517 = vmatpush3.msra.mxu1 %v4368_v8 }
 0x5da   :  { %v4385_v30 = vadd.f32 %v4147_v11, %v214_v14  ;;  %3518 = vmatprep.subr.mxu1 %v3842_v36  ;;  %v4399_v11 = vadd.f32 %v4180_v29, %v274_v41 }
 0x5db   :  { %3519 = vmatpush3.msra.mxu1 %v4377_v52 }
 0x5dc   :  { %1445 = vxpose.xlu0.b32.start [1/4] (short) (narrow) %v4385_v30, 8  ;;  %3514 = vmatmul.mubr.msk.f32.gmra.mxu1 %vm899_vm2, %v4382_v60 }
 0x5dd   :  { %3520 = vmatprep.subr.mxu1 %v3842_v36  ;;  %v354_v16 = vpop.permute.xlu0 %353  ;;  %3524 = vmatprep.mubr.msk.f32.mxu1 %vm3843_vm0, %v3842_v36 }
 0x5de   :  { %v4401_v17 = vadd.f32 %v753_v31, %v354_v16  ;;  %3521 = vmatpush3.msra.mxu1 %v4390_v15 }
 0x5df   :  { %3522 = vmatprep.subr.mxu1 %v3842_v36 }
 0x5e0   :  { %3523 = vmatpush3.msra.mxu1 %v4399_v11 }
 0x5e1   :  { %3525 = vmatmul.mubr.msk.f32.vlgmr.msra.gmra.mxu1 %vm824_vm1, %v1244_v53 }
 0x5e2   :  { %3529 = vmatprep.mubr.msk.f32.mxu1 %vm899_vm2, %v4401_v17 }
 0x698   :  { %v4409_v28 = vpop.f32.mrf.mxu1 }
 0x69a   :  { %v4411_v19 = vpop.f32.mrf.mxu1 }
 0x69c   :  { %v4413_v21 = vpop.f32.mrf.mxu1 }
 0x69e   :  { %v4415_v29 = vpop.f32.mrf.mxu1 }
 0x6a1   :  { %v1329_v34 = vpop.f32.mrf.mxu1 }
 0x6a2   :  { %v1333_v37 = vmul.f32 0.17677669, %v1329_v34 }
 0x6a3   :  { %v3526_v40 = vpop.f32.mrf.mxu1 }
 0x6a4   :  { %v1334_v41 = vsel %vm899_vm2, %v1333_v37, -inf }
 0x6a5   :  { %1335 = vmax.xlane.f32.xlu1 %v1334_v41 }
 0x6b6   :  { %218 = vperm.xlu1 %3755, %v116_v43  }
 0x6ba   :  { %223 = vperm.xlu1 %3755, %v117_v45   ;;  %v359_v45 = vpop.permute.xlu0 %358 }
 0x6be   :  { %228 = vperm.xlu1 %3755, %v118_v47  }
 0x72e   :  { %v1336_v53 = vpop.xlane.xlu1 %1335 }
 0x72f   :  { %v1337_v6 = vsub.f32 %v1333_v37, %v1336_v53 }
 0x731   :  { %v1338_v25 = vmul.f32 1.442695, %v1337_v6 }
 0x732   :  { %v219_v14 = vpop.permute.xlu1 %218 }
 0x733   :  { %3764 = vpow2.f32 %v1338_v25  ;;  %v4428_v31 = vadd.f32 %v4145_v10, %v219_v14  ;;  %v131_v10 = vld [vmem:[%s4921_s2 + $0xe0] sm:$0xff] }
 0x735   :  { %1446 = vxpose.xlu0.b32.cont [2/4] (short) (narrow) %v4428_v31, 8 }
 0x736   :  { %v224_v16 = vpop.permute.xlu1 %223 }
 0x737   :  { %v4432_v34 = vadd.f32 %v4151_v13, %v224_v16  ;;  %v309_v13 = vpop.permute.xlu0 %308 }
 0x739   :  { %1447 = vxpose.xlu0.b32.cont [3/4] (short) (narrow) %v4432_v34, 8 }
 0x73a   :  { %v229_v40 = vpop.permute.xlu1 %228 }
 0x73b   :  { %v4436_v41 = vadd.f32 %v4149_v12, %v229_v40  ;;  %v304_v53 = vpop.permute.xlu0 %303  ;;  %v3471_v12 = vpop.f32.mrf.mxu0 }
 0x73d   :  { %1448 = vxpose.xlu0.b32.end [4/4] (short) (narrow) %v4436_v41, 8  ;;  %v763_v40 = vpop.f32.mrf.mxu0 }
 0x73f   :  { %v364_v6 = vpop.permute.xlu0 %363 }
 0x740   :  { %v3765_v37 = vpop.eup %3764 }
 0x741   :  { %v1340_v43 = vsel %vm899_vm2, %v3765_v37, 0.0 }
 0x742   :  { %1341 = vadd.xlane.f32.xlu1 %v1340_v43  ;;  %v4446_v43 = vadd.f32 %v4372_v0, %v359_v45 }
 0x743   :  { %v369_v14 = vpop.permute.xlu0 %368 }
 0x744   :  { %v4462_v0 = vadd.f32 %v3471_v12, %v369_v14 }
 0x747   :  { %v299_v60 = vpop.permute.xlu0 %298 }
 0x753   :  { %293 = vperm.xlu1 %3755, %v131_v10   ;;  %v4450_v10 = vadd.f32 %v4191_v35, %v309_v13  ;;  %v4466_v35 = vadd.f32 %v4186_v32, %v299_v60 }
 0x7ad   :  { %v1461_v13 = vpop.trf.xlu0 }
 0x7cb   :  { %v1342_v47 = vpop.xlane.xlu1 %1341 }
 0x7cc   :  { %3766 = vrcp.f32 %v1342_v47  ;;  %v4452_v47 = vadd.f32 %v763_v40, %v364_v6  ;;  %v148_v40 = vld [vmem:[%s4921_s2 + $0x168] sm:$0xff] }
 0x7cf   :  { %v294_v45 = vpop.permute.xlu1 %293 }
 0x7d9   :  { %v3767_v25 = vpop.eup %3766 }
 0x7da   :  { %v1344_v16 = vmul.f32 %v3767_v25, %v3765_v37  ;;  %v4457_v37 = vadd.f32 %v4193_v38, %v304_v53  ;;  %v4473_v38 = vadd.f32 %v4188_v33, %v294_v45  ;;  %v149_v45 = vld [vmem:[%s4921_s2 + $0x170] sm:$0xff] }
 0x7dc   :  { %3527 = vmatprep.subr.msk.mxu1 %vm899_vm2, %v1344_v16 }
 0x7dd   :  { %3528 = vmatpush3.xpose.msk.msra.mxu1 %vm899_vm2, %v1344_v16  ;;  %v147_v16 = vld [vmem:[%s4921_s2 + $0x160] sm:$0xff] }
 0x7de   :  { %3535 = vmatprep.subr.mxu1 %v3842_v36 }
 0x7e0   :  { %3530 = vmatmul.mubr.msk.f32.vlgmr.msra.gmra.mxu1 %vm899_vm2, %v4446_v43 }
 0x7e1   :  { %3532 = vmatprep.mubr.msk.f32.mxu1 %vm899_vm2, %v4452_v47  ;;  %3536 = vmatpush3.msra.mxu1 %v4450_v10 }
 0x7e2   :  { %3537 = vmatprep.subr.mxu1 %v3842_v36 }
 0x7e3   :  { %3538 = vmatpush3.msra.mxu1 %v4457_v37 }
 0x7e4   :  { %3533 = vmatmul.mubr.msk.f32.gmra.mxu1 %vm899_vm2, %v4462_v0  ;;  %3539 = vmatprep.subr.mxu1 %v3842_v36 }
 0x7e5   :  { %3540 = vmatpush3.msra.mxu1 %v4466_v35  ;;  %3543 = vmatprep.mubr.msk.f32.mxu1 %vm3843_vm0, %v3842_v36 }
 0x7e6   :  { %3541 = vmatprep.subr.mxu1 %v3842_v36 }
 0x7e7   :  { %3542 = vmatpush3.msra.mxu1 %v4473_v38 }
 0x7e8   :  { %3544 = vmatmul.mubr.msk.f32.vlgmr.msra.gmra.mxu1 %vm824_vm1, %v1461_v13  ;;  %v150_v13 = vld [vmem:[%s4921_s2 + $0x178] sm:$0xff] }
 0x8a0   :  { %v3531_v32 = vpop.f32.mrf.mxu1 }
 0x8a2   :  { %v1426_v60 = vpop.f32.mrf.mxu1 }
 0x8a4   :  { %v3534_v53 = vpop.f32.mrf.mxu1 }
 0x8a6   :  { %v1436_v6 = vpop.f32.mrf.mxu1 }
 0x8a8   :  { %v1546_v25 = vpop.f32.mrf.mxu1 }
 0x8a9   :  { %v1550_v12 = vmul.f32 0.17677669, %v1546_v25 }
 0x8aa   :  { %v3545_v33 = vpop.f32.mrf.mxu1 }
 0x8ab   :  { %v1551_v14 = vsel %vm899_vm2, %v1550_v12, -inf }
 0x8ac   :  { %1552 = vmax.xlane.f32.xlu1 %v1551_v14 }
 0x8bd   :  { %373 = vperm.xlu1 %3755, %v147_v16   ;;  %v4606_v16 = vld [vmem:[%s4922_s3 + $0x40] sm:$0xff] }
 0x8c1   :  { %378 = vperm.xlu1 %3755, %v148_v40   ;;  %v4611_v40 = vld [vmem:[%s4922_s3 + $0x38] sm:$0xff] }
 0x8c5   :  { %383 = vperm.xlu1 %3755, %v149_v45   ;;  %v4620_v45 = vld [vmem:[%s4922_s3 + $0x30] sm:$0xff] }
 0x8c9   :  { %388 = vperm.xlu1 %3755, %v150_v13   ;;  %v4625_v13 = vld [vmem:[%s4922_s3 + $0x28] sm:$0xff] }
 0x8cd   :  { %1784 = vrot.lane.b32.xlu1 %v4117_v57, %s3844_s12  ;;  %v3474_v57 = vpop.f32.mrf.mxu0 }
 0x8d1   :  { %1786 = vrot.lane.b32.xlu1 %v4120_v59, %s3844_s12 }
 0x8d5   :  { %1790 = vrot.lane.b32.xlu1 %v4126_v1, %s3844_s12 }
 0x8d9   :  { %1838 = vrot.lane.b32.xlu1 %v4153_v18, %s3844_s12 }
 0x8dd   :  { %1836 = vrot.lane.b32.xlu1 %v4156_v20, %s3844_s12  ;;  %v773_v20 = vpop.f32.mrf.mxu0 }
 0x8e1   :  { %1834 = vrot.lane.b32.xlu1 %v4160_v22, %s3844_s12 }
 0x8e5   :  { %1832 = vrot.lane.b32.xlu1 %v4165_v23, %s3844_s12 }
 0x90e   :  { %1678 = vxpose.xlu1.b32.start [1/16] (narrow) %v4305_v4, 8 }
 0x912   :  { %1679 = vxpose.xlu1.b32.cont [2/16] (narrow) %v4303_v3, 8 }
 0x916   :  { %1680 = vxpose.xlu1.b32.cont [3/16] (narrow) %v4309_v5, 8 }
 0x91a   :  { %1681 = vxpose.xlu1.b32.cont [4/16] (narrow) %v4307_v7, 8 }
 0x91e   :  { %1682 = vxpose.xlu1.b32.cont [5/16] (narrow) %v4411_v19, 8 }
 0x922   :  { %1683 = vxpose.xlu1.b32.cont [6/16] (narrow) %v4409_v28, 8 }
 0x926   :  { %1684 = vxpose.xlu1.b32.cont [7/16] (narrow) %v4415_v29, 8 }
 0x92a   :  { %1685 = vxpose.xlu1.b32.cont [8/16] (narrow) %v4413_v21, 8 }
 0x92e   :  { %1686 = vxpose.xlu1.b32.cont [9/16] (narrow) %v1426_v60, 8 }
 0x932   :  { %1687 = vxpose.xlu1.b32.cont [10/16] (narrow) %v3531_v32, 8 }
 0x935   :  { %v1553_v59 = vpop.xlane.xlu1 %1552 }
 0x936   :  { %v1554_v1 = vsub.f32 %v1550_v12, %v1553_v59  ;;  %1688 = vxpose.xlu1.b32.cont [11/16] (narrow) %v1436_v6, 8  ;;  %v3477_v6 = vpop.f32.mrf.mxu0  ;;  %v4639_v59 = vld [vmem:[%s4922_s3 + $0x18] sm:$0xff] }
 0x938   :  { %v1555_v18 = vmul.f32 1.442695, %v1554_v1  ;;  %v4648_v1 = vld [vmem:[%s4922_s3 + $0x10] sm:$0xff] }
 0x939   :  { %v374_v22 = vpop.permute.xlu1 %373 }
 0x93a   :  { %3768 = vpow2.f32 %v1555_v18  ;;  %v4516_v23 = vadd.f32 %v773_v20, %v374_v22  ;;  %1689 = vxpose.xlu1.b32.cont [12/16] (narrow) %v3534_v53, 8  ;;  %v4653_v18 = vld [vmem:[%s4922_s3 + $0x8] sm:$0xff]  ;;  %v4662_v20 = vld [vmem:[%s4922_s3] sm:$0xff] }
 0x93c   :  { %3548 = vmatprep.mubr.msk.f32.mxu1 %vm899_vm2, %v4516_v23 }
 0x93d   :  { %v379_v7 = vpop.permute.xlu1 %378 }
 0x93e   :  { %v4525_v12 = vadd.f32 %v3474_v57, %v379_v7  ;;  %v4634_v57 = vld [vmem:[%s4922_s3 + $0x20] sm:$0xff] }
 0x941   :  { %v384_v5 = vpop.permute.xlu1 %383 }
 0x945   :  { %v389_v28 = vpop.permute.xlu1 %388 }
 0x946   :  { %v4534_v14 = vadd.f32 %v3477_v6, %v389_v28 }
 0x947   :  { %v3769_v3 = vpop.eup %3768 }
 0x948   :  { %v1557_v4 = vsel %vm899_vm2, %v3769_v3, 0.0 }
 0x949   :  { %1558 = vadd.xlane.f32.xlu0 %v1557_v4  ;;  %v1785_v19 = vpop.permute.xlu1 %1784 }
 0x94d   :  { %v1787_v21 = vpop.permute.xlu1 %1786 }
 0x951   :  { %v1791_v60 = vpop.permute.xlu1 %1790 }
 0x95f   :  { %1788 = vrot.lane.b32.xlu0 %v4123_v63, %s3844_s12  ;;  %v783_v63 = vpop.f32.mrf.mxu0 }
 0x960   :  { %v4528_v33 = vadd.f32 %v783_v63, %v384_v5  ;;  %v1839_v5 = vpop.permute.xlu1 %1838 }
 0x964   :  { %v1837_v28 = vpop.permute.xlu1 %1836 }
 0x97d   :  { %1796 = vxpose.xlu0.b32.start [1/4] (short) (narrow) %v1785_v19, 8  ;;  %v1835_v19 = vpop.permute.xlu1 %1834 }
 0x981   :  { %1797 = vxpose.xlu0.b32.cont [2/4] (short) (narrow) %v1787_v21, 8 }
 0x9d2   :  { %v1559_v29 = vpop.xlane.xlu0 %1558 }
 0x9d3   :  { %3770 = vrcp.f32 %v1559_v29 }
 0x9d6   :  { %v1789_v32 = vpop.permute.xlu0 %1788 }
 0x9d7   :  { %1798 = vxpose.xlu0.b32.cont [3/4] (short) (narrow) %v1789_v32, 8 }
 0x9db   :  { %1799 = vxpose.xlu0.b32.end [4/4] (short) (narrow) %v1791_v60, 8 }
 0x9e0   :  { %v3771_v53 = vpop.eup %3770 }
 0x9e1   :  { %v1561_v25 = vmul.f32 %v3771_v53, %v3769_v3 }
 0x9e3   :  { %3546 = vmatprep.subr.msk.mxu1 %vm899_vm2, %v1561_v25 }
 0x9e4   :  { %3547 = vmatpush3.xpose.msk.msra.mxu1 %vm899_vm2, %v1561_v25 }
 0x9e5   :  { %3554 = vmatprep.subr.mxu1 %v3842_v36 }
 0x9e7   :  { %3549 = vmatmul.mubr.msk.f32.vlgmr.msra.gmra.mxu1 %vm899_vm2, %v4525_v12 }
 0x9e8   :  { %3551 = vmatprep.mubr.msk.f32.mxu1 %vm899_vm2, %v4528_v33 }
 0x9eb   :  { %3552 = vmatmul.mubr.msk.f32.gmra.mxu1 %vm899_vm2, %v4534_v14 }
 0x9ec   :  { %3586 = vmatprep.mubr.msk.f32.mxu1 %vm3843_vm0, %v3842_v36 }
 0xa04   :  { %2037 = vrot.lane.b32.xlu0 %v4212_v54, %s3844_s12  ;;  %v4557_v54 = vld [vmem:[%s4922_s3 + $0x78] sm:$0xff] }
 0xa05   :  { %3555 = vmatpush3.msra.mxu1 %v4557_v54 }
 0xa06   :  { %3556 = vmatprep.subr.mxu1 %v3842_v36 }
 0xa08   :  { %2041 = vrot.lane.b32.xlu0 %v4220_v58, %s3844_s12  ;;  %v4564_v58 = vld [vmem:[%s4922_s3 + $0x70] sm:$0xff] }
 0xa09   :  { %3557 = vmatpush3.msra.mxu1 %v4564_v58 }
 0xa0a   :  { %3558 = vmatprep.subr.mxu1 %v3842_v36 }
 0xa0c   :  { %2043 = vrot.lane.b32.xlu0 %v4224_v61, %s3844_s12  ;;  %v4569_v61 = vld [vmem:[%s4922_s3 + $0x68] sm:$0xff] }
 0xa0d   :  { %3559 = vmatpush3.msra.mxu1 %v4569_v61 }
 0xa0e   :  { %3560 = vmatprep.subr.mxu1 %v3842_v36 }
 0xa10   :  { %2290 = vrot.lane.b32.xlu0 %v4293_v24, %s3844_s12  ;;  %v4578_v24 = vld [vmem:[%s4922_s3 + $0x60] sm:$0xff] }
 0xa11   :  { %3561 = vmatpush3.msra.mxu1 %v4578_v24 }
 0xa12   :  { %3562 = vmatprep.subr.mxu1 %v3842_v36 }
 0xa14   :  { %2292 = vrot.lane.b32.xlu0 %v4322_v44, %s3844_s12  ;;  %v4583_v44 = vld [vmem:[%s4922_s3 + $0x58] sm:$0xff] }
 0xa15   :  { %3563 = vmatpush3.msra.mxu1 %v4583_v44 }
 0xa16   :  { %3564 = vmatprep.subr.mxu1 %v3842_v36 }
 0xa18   :  { %2294 = vrot.lane.b32.xlu0 %v4326_v46, %s3844_s12  ;;  %v4592_v46 = vld [vmem:[%s4922_s3 + $0x50] sm:$0xff] }
 0xa19   :  { %3565 = vmatpush3.msra.mxu1 %v4592_v46 }
 0xa1a   :  { %3566 = vmatprep.subr.mxu1 %v3842_v36 }
 0xa1c   :  { %2543 = vrot.lane.b32.xlu0 %v4385_v30, %s3844_s12  ;;  %v4597_v30 = vld [vmem:[%s4922_s3 + $0x48] sm:$0xff] }
 0xa1d   :  { %3567 = vmatpush3.msra.mxu1 %v4597_v30 }
 0xa1e   :  { %3568 = vmatprep.subr.mxu1 %v3842_v36 }
 0xa1f   :  { %3569 = vmatpush3.msra.mxu1 %v4606_v16 }
 0xa20   :  { %3570 = vmatprep.subr.mxu1 %v3842_v36 }
 0xa21   :  { %3571 = vmatpush3.msra.mxu1 %v4611_v40 }
 0xa22   :  { %3572 = vmatprep.subr.mxu1 %v3842_v36 }
 0xa23   :  { %3573 = vmatpush3.msra.mxu1 %v4620_v45 }
 0xa24   :  { %3574 = vmatprep.subr.mxu1 %v3842_v36 }
 0xa25   :  { %3575 = vmatpush3.msra.mxu1 %v4625_v13 }
 0xa26   :  { %3576 = vmatprep.subr.mxu1 %v3842_v36 }
 0xa27   :  { %3577 = vmatpush3.msra.mxu1 %v4634_v57 }
 0xa28   :  { %3578 = vmatprep.subr.mxu1 %v3842_v36 }
 0xa29   :  { %3579 = vmatpush3.msra.mxu1 %v4639_v59 }
 0xa2a   :  { %3580 = vmatprep.subr.mxu1 %v3842_v36 }
 0xa2b   :  { %3581 = vmatpush3.msra.mxu1 %v4648_v1 }
 0xa2c   :  { %3582 = vmatprep.subr.mxu1 %v3842_v36 }
 0xa2d   :  { %3583 = vmatpush3.msra.mxu1 %v4653_v18 }
 0xa2e   :  { %3584 = vmatprep.subr.mxu1 %v3842_v36 }
 0xa2f   :  { %3585 = vmatpush3.msra.mxu1 %v4662_v20 }
 0xa30   :  { %3589 = vmatprep.subr.mxu1 %v3842_v36 }
 0xaa7   :  { %v3550_v22 = vpop.f32.mrf.mxu1 }
 0xaa9   :  { %v1643_v3 = vpop.f32.mrf.mxu1 }
 0xaaa   :  { %1690 = vxpose.xlu1.b32.cont [13/16] (narrow) %v1643_v3, 8 }
 0xaab   :  { %v3553_v4 = vpop.f32.mrf.mxu1 }
 0xaad   :  { %v1653_v7 = vpop.f32.mrf.mxu1 }
 0xaae   :  { %1691 = vxpose.xlu1.b32.cont [14/16] (narrow) %v3550_v22, 8 }
 0xab2   :  { %1692 = vxpose.xlu1.b32.cont [15/16] (narrow) %v1653_v7, 8 }
 0xab6   :  { %1693 = vxpose.xlu1.b32.end [16/16] (narrow) %v3553_v4, 8 }
 0xad4   :  { %2039 = vrot.lane.b32.xlu1 %v4216_v56, %s3844_s12  ;;  %v1833_v56 = vpop.permute.xlu1 %1832 }
 0xad8   :  { %2296 = vrot.lane.b32.xlu1 %v4330_v48, %s3844_s12 }
 0xadc   :  { %2545 = vrot.lane.b32.xlu1 %v4428_v31, %s3844_s12 }
 0xae0   :  { %2549 = vrot.lane.b32.xlu1 %v4436_v41, %s3844_s12 }
 0xae4   :  { %1931 = vrot.lane.b32.xlu1 %v4258_v49, %s3844_s12  ;;  %v1812_v49 = vpop.trf.xlu0 }
 0xae8   :  { %1933 = vrot.lane.b32.xlu1 %v4264_v51, %s3844_s12  ;;  %v2038_v51 = vpop.permute.xlu0 %2037 }
 0xaec   :  { %1935 = vrot.lane.b32.xlu1 %v4274_v39, %s3844_s12  ;;  %v2042_v39 = vpop.permute.xlu0 %2041 }
 0xaf0   :  { %2085 = vrot.lane.b32.xlu1 %v4287_v27, %s3844_s12  ;;  %v2044_v27 = vpop.permute.xlu0 %2043 }
 0xaf4   :  { %2342 = vrot.lane.b32.xlu1 %v4377_v52, %s3844_s12  ;;  %v2291_v52 = vpop.permute.xlu0 %2290 }
 0xaf6   :  { %v1694_v48 = vpop.trf.xlu1 }
 0xaf7   :  { %3587 = vmatmul.mubr.f32.vlgmr.msra.gmra.mxu1 %v1694_v48 }
 0xaf8   :  { %3590 = vmatpush3.msra.mxu1 %v1839_v5  ;;  %2338 = vrot.lane.b32.xlu1 %v4399_v11, %s3844_s12  ;;  %v2293_v11 = vpop.permute.xlu0 %2292 }
 0xaf9   :  { %3591 = vmatprep.subr.mxu1 %v3842_v36  ;;  %3597 = vmatprep.mubr.msk.f32.mxu1 %vm3843_vm0, %v3842_v36 }
 0xafa   :  { %3592 = vmatpush3.msra.mxu1 %v1837_v28 }
 0xafb   :  { %3593 = vmatprep.subr.mxu1 %v3842_v36 }
 0xafc   :  { %3594 = vmatpush3.msra.mxu1 %v1835_v19  ;;  %2595 = vrot.lane.b32.xlu1 %v4457_v37, %s3844_s12  ;;  %v2295_v31 = vpop.permute.xlu0 %2294 }
 0xafd   :  { %3595 = vmatprep.subr.mxu1 %v3842_v36 }
 0xafe   :  { %3596 = vmatpush3.msra.mxu1 %v1833_v56 }
 0xaff   :  { %3598 = vmatmul.mubr.msk.f32.vlgmr.msra.gmra.mxu1 %vm824_vm1, %v1812_v49 }
 0xb00   :  { %2591 = vrot.lane.b32.xlu1 %v4473_v38, %s3844_s12 }
 0xb29   :  { %2302 = vxpose.xlu1.b32.start [1/4] (short) (narrow) %v2291_v52, 8 }
 0xb2d   :  { %2303 = vxpose.xlu1.b32.cont [2/4] (short) (narrow) %v2293_v11, 8 }
 0xb31   :  { %2304 = vxpose.xlu1.b32.cont [3/4] (short) (narrow) %v2295_v31, 8 }
 0xb46   :  { %v2040_v41 = vpop.permute.xlu1 %2039 }
 0xb4a   :  { %v2297_v37 = vpop.permute.xlu1 %2296 }
 0xb4b   :  { %2305 = vxpose.xlu1.b32.end [4/4] (short) (narrow) %v2297_v37, 8 }
 0xbb7   :  { %v4696_v21 = vpop.f32.mrf.mxu1 }
 0xbb9   :  { %v3588_v29 = vpop.f32.mrf.mxu1 }
 0xbbf   :  { %v1913_v32 = vpop.f32.mrf.mxu1 }
 0xbc0   :  { %v1917_v60 = vmul.f32 0.17677669, %v1913_v32 }
 0xbc1   :  { %v3599_v53 = vpop.f32.mrf.mxu1 }
 0xbc2   :  { %v1918_v38 = vsel %vm899_vm2, %v1917_v60, -inf }
 0xbc3   :  { %1919 = vmax.xlane.f32.xlu0 %v1918_v38 }
 0xbd9   :  { %2547 = vrot.lane.b32.xlu0 %v4432_v34, %s3844_s12  ;;  %v2544_v34 = vpop.permute.xlu0 %2543 }
 0xbdd   :  { %1929 = vrot.lane.b32.xlu0 %v4197_v42, %s3844_s12 }
 0xbe1   :  { %2091 = vrot.lane.b32.xlu0 %v4262_v50, %s3844_s12 }
 0xbe5   :  { %2089 = vrot.lane.b32.xlu0 %v4269_v55, %s3844_s12 }
 0xbe9   :  { %2087 = vrot.lane.b32.xlu0 %v4278_v26, %s3844_s12 }
 0xbed   :  { %2344 = vrot.lane.b32.xlu0 %v4368_v8, %s3844_s12  ;;  %v2546_v8 = vpop.permute.xlu1 %2545 }
 0xbf1   :  { %2340 = vrot.lane.b32.xlu0 %v4390_v15, %s3844_s12  ;;  %v2550_v15 = vpop.permute.xlu1 %2549 }
 0xbf5   :  { %2597 = vrot.lane.b32.xlu0 %v4450_v10, %s3844_s12  ;;  %v1932_v28 = vpop.permute.xlu1 %1931 }
 0xc4c   :  { %v1920_v42 = vpop.xlane.xlu0 %1919 }
 0xc4d   :  { %v1921_v6 = vsub.f32 %v1917_v60, %v1920_v42 }
 0xc4f   :  { %v1922_v25 = vmul.f32 1.442695, %v1921_v6 }
 0xc50   :  { %v2548_v50 = vpop.permute.xlu0 %2547 }
 0xc51   :  { %3772 = vpow2.f32 %v1922_v25 }
 0xc54   :  { %v1930_v63 = vpop.permute.xlu0 %1929 }
 0xc55   :  { %3602 = vmatprep.mubr.msk.f32.mxu1 %vm899_vm2, %v1930_v63 }
 0xc58   :  { %v2092_v10 = vpop.permute.xlu0 %2091 }
 0xc5c   :  { %v2090_v22 = vpop.permute.xlu0 %2089 }
 0xc5e   :  { %v3773_v55 = vpop.eup %3772 }
 0xc5f   :  { %v1924_v26 = vsel %vm899_vm2, %v3773_v55, 0.0 }
 0xc60   :  { %1925 = vadd.xlane.f32.xlu0 %v1924_v26  ;;  %v2088_v3 = vpop.permute.xlu0 %2087 }
 0xc64   :  { %v2345_v4 = vpop.permute.xlu0 %2344 }
 0xc68   :  { %v2341_v7 = vpop.permute.xlu0 %2340 }
 0xc6c   :  { %v2598_v5 = vpop.permute.xlu0 %2597 }
 0xc76   :  { %2593 = vrot.lane.b32.xlu0 %v4466_v35, %s3844_s12  ;;  %v1934_v35 = vpop.permute.xlu1 %1933 }
 0xc7a   :  { %v1936_v56 = vpop.permute.xlu1 %1935 }
 0xc94   :  { %2049 = vxpose.xlu0.b32.start [1/4] (short) (narrow) %v2038_v51, 8  ;;  %v2086_v51 = vpop.permute.xlu1 %2085 }
 0xc98   :  { %2050 = vxpose.xlu0.b32.cont [2/4] (short) (narrow) %v2040_v41, 8 }
 0xc9c   :  { %2051 = vxpose.xlu0.b32.cont [3/4] (short) (narrow) %v2042_v39, 8  ;;  %v2343_v39 = vpop.permute.xlu1 %2342 }
 0xca0   :  { %2052 = vxpose.xlu0.b32.end [4/4] (short) (narrow) %v2044_v27, 8  ;;  %v2339_v27 = vpop.permute.xlu1 %2338 }
 0xca4   :  { %2555 = vxpose.xlu0.b32.start [1/4] (short) (narrow) %v2544_v34, 8  ;;  %v2596_v52 = vpop.permute.xlu1 %2595 }
 0xca8   :  { %2556 = vxpose.xlu0.b32.cont [2/4] (short) (narrow) %v2546_v8, 8  ;;  %v2592_v41 = vpop.permute.xlu1 %2591  ;;  %v3792_v8 = vld [vmem:[#allocation2] sm:$0xff] }
 0xcac   :  { %2557 = vxpose.xlu0.b32.cont [3/4] (short) (narrow) %v2548_v50, 8  ;;  %v2318_v37 = vpop.trf.xlu1 }
 0xcb0   :  { %2558 = vxpose.xlu0.b32.end [4/4] (short) (narrow) %v2550_v15, 8 }
 0xce9   :  { %v1926_v19 = vpop.xlane.xlu0 %1925 }
 0xcea   :  { %3774 = vrcp.f32 %v1926_v19 }
 0xced   :  { %v2594_v11 = vpop.permute.xlu0 %2593 }
 0xcf7   :  { %v3775_v48 = vpop.eup %3774 }
 0xcf8   :  { %v1928_v49 = vmul.f32 %v3775_v48, %v3773_v55 }
 0xcfa   :  { %3600 = vmatprep.subr.msk.mxu1 %vm899_vm2, %v1928_v49 }
 0xcfb   :  { %3601 = vmatpush3.xpose.msk.msra.mxu1 %vm899_vm2, %v1928_v49 }
 0xcfc   :  { %3608 = vmatprep.subr.mxu1 %v3842_v36 }
 0xcfe   :  { %3603 = vmatmul.mubr.msk.f32.vlgmr.msra.gmra.mxu1 %vm899_vm2, %v1932_v28 }
 0xcff   :  { %3605 = vmatprep.mubr.msk.f32.mxu1 %vm899_vm2, %v1934_v35  ;;  %3609 = vmatpush3.msra.mxu1 %v2092_v10 }
 0xd00   :  { %3610 = vmatprep.subr.mxu1 %v3842_v36 }
 0xd01   :  { %3611 = vmatpush3.msra.mxu1 %v2090_v22 }
 0xd02   :  { %3606 = vmatmul.mubr.msk.f32.gmra.mxu1 %vm899_vm2, %v1936_v56  ;;  %3612 = vmatprep.subr.mxu1 %v3842_v36 }
 0xd03   :  { %3613 = vmatpush3.msra.mxu1 %v2088_v3  ;;  %3616 = vmatprep.mubr.msk.f32.mxu1 %vm3843_vm0, %v3842_v36 }
 0xd04   :  { %3614 = vmatprep.subr.mxu1 %v3842_v36 }
 0xd05   :  { %3615 = vmatpush3.msra.mxu1 %v2086_v51 }
 0xd06   :  { %3627 = vmatprep.subr.mxu1 %v3842_v36 }
 0xd10   :  { %v2065_v31 = vpop.trf.xlu0 }
 0xd11   :  { %3617 = vmatmul.mubr.msk.f32.vlgmr.msra.gmra.mxu1 %vm824_vm1, %v2065_v31 }
 0xd12   :  { %3628 = vmatpush3.msra.mxu1 %v2345_v4  ;;  %3635 = vmatprep.mubr.msk.f32.mxu1 %vm3843_vm0, %v3842_v36 }
 0xd13   :  { %3629 = vmatprep.subr.mxu1 %v3842_v36 }
 0xd14   :  { %3630 = vmatpush3.msra.mxu1 %v2343_v39 }
 0xd15   :  { %3631 = vmatprep.subr.mxu1 %v3842_v36 }
 0xd16   :  { %3632 = vmatpush3.msra.mxu1 %v2341_v7 }
 0xd17   :  { %3633 = vmatprep.subr.mxu1 %v3842_v36 }
 0xd18   :  { %3634 = vmatpush3.msra.mxu1 %v2339_v27 }
 0xd19   :  { %3636 = vmatmul.mubr.msk.f32.vlgmr.msra.gmra.mxu1 %vm824_vm1, %v2318_v37  ;;  %3646 = vmatprep.subr.mxu1 %v3842_v36 }
 0xd1a   :  { %3647 = vmatpush3.msra.mxu1 %v2598_v5  ;;  %3654 = vmatprep.mubr.msk.f32.mxu1 %vm3843_vm0, %v3842_v36 }
 0xd1b   :  { %3648 = vmatprep.subr.mxu1 %v3842_v36 }
 0xd1c   :  { %3649 = vmatpush3.msra.mxu1 %v2596_v52 }
 0xd1d   :  { %3650 = vmatprep.subr.mxu1 %v3842_v36 }
 0xd1e   :  { %3651 = vmatpush3.msra.mxu1 %v2594_v11 }
 0xd1f   :  { %3652 = vmatprep.subr.mxu1 %v3842_v36 }
 0xd20   :  { %3653 = vmatpush3.msra.mxu1 %v2592_v41  ;;  %v2571_v29 = vpop.trf.xlu0 }
 0xd21   :  { %3655 = vmatmul.mubr.msk.f32.vlgmr.msra.gmra.mxu1 %vm824_vm1, %v2571_v29  ;;  %3665 = vmatprep.subr.mxu1 %v3842_v36 }
 0xd22   :  { %3666 = vmatpush3.msra.mxu1 %v4557_v54  ;;  %3697 = vmatprep.mubr.msk.f32.mxu1 %vm3843_vm0, %v3842_v36 }
 0xd23   :  { %3667 = vmatprep.subr.mxu1 %v3842_v36 }
 0xd24   :  { %3668 = vmatpush3.msra.mxu1 %v4564_v58 }
 0xd25   :  { %3669 = vmatprep.subr.mxu1 %v3842_v36 }
 0xd26   :  { %3670 = vmatpush3.msra.mxu1 %v4569_v61 }
 0xd27   :  { %3671 = vmatprep.subr.mxu1 %v3842_v36 }
 0xd28   :  { %3672 = vmatpush3.msra.mxu1 %v4578_v24 }
 0xd29   :  { %3673 = vmatprep.subr.mxu1 %v3842_v36 }
 0xd2a   :  { %3674 = vmatpush3.msra.mxu1 %v4583_v44 }
 0xd2b   :  { %3675 = vmatprep.subr.mxu1 %v3842_v36 }
 0xd2c   :  { %3676 = vmatpush3.msra.mxu1 %v4592_v46 }
 0xd2d   :  { %3677 = vmatprep.subr.mxu1 %v3842_v36 }
 0xd2e   :  { %3678 = vmatpush3.msra.mxu1 %v4597_v30 }
 0xd2f   :  { %3679 = vmatprep.subr.mxu1 %v3842_v36 }
 0xd30   :  { %3680 = vmatpush3.msra.mxu1 %v4606_v16 }
 0xd31   :  { %3681 = vmatprep.subr.mxu1 %v3842_v36 }
 0xd32   :  { %3682 = vmatpush3.msra.mxu1 %v4611_v40 }
 0xd33   :  { %3683 = vmatprep.subr.mxu1 %v3842_v36 }
 0xd34   :  { %3684 = vmatpush3.msra.mxu1 %v4620_v45 }
 0xd35   :  { %3685 = vmatprep.subr.mxu1 %v3842_v36 }
 0xd36   :  { %3686 = vmatpush3.msra.mxu1 %v4625_v13 }
 0xd37   :  { %3687 = vmatprep.subr.mxu1 %v3842_v36 }
 0xd38   :  { %3688 = vmatpush3.msra.mxu1 %v4634_v57 }
 0xd39   :  { %3689 = vmatprep.subr.mxu1 %v3842_v36 }
 0xd3a   :  { %3690 = vmatpush3.msra.mxu1 %v4639_v59 }
 0xd3b   :  { %3691 = vmatprep.subr.mxu1 %v3842_v36 }
 0xd3c   :  { %3692 = vmatpush3.msra.mxu1 %v4648_v1 }
 0xd3d   :  { %3693 = vmatprep.subr.mxu1 %v3842_v36 }
 0xd3e   :  { %3694 = vmatpush3.msra.mxu1 %v4653_v18 }
 0xd3f   :  { %3695 = vmatprep.subr.mxu1 %v3842_v36 }
 0xd40   :  { %3696 = vmatpush3.msra.mxu1 %v4662_v20  ;;  %v4933_v20 = vld [vmem:[#allocation8_spill] sm:$0xff] }
 0xdbe   :  { %v3604_v54 = vpop.f32.mrf.mxu1 }
 0xdc0   :  { %v2014_v58 = vpop.f32.mrf.mxu1 }
 0xdc2   :  { %v3607_v61 = vpop.f32.mrf.mxu1 }
 0xdc4   :  { %v2024_v24 = vpop.f32.mrf.mxu1 }
 0xdd1   :  { %v2166_v44 = vpop.f32.mrf.mxu1 }
 0xdd2   :  { %v2170_v46 = vmul.f32 0.17677669, %v2166_v44 }
 0xdd3   :  { %v3618_v30 = vpop.f32.mrf.mxu1 }
 0xdd4   :  { %v2171_v16 = vsel %vm899_vm2, %v2170_v46, -inf }
 0xdd5   :  { %2172 = vmax.xlane.f32.xlu1 %v2171_v16 }
 0xdd9   :  { %v2419_v40 = vpop.f32.mrf.mxu1 }
 0xdda   :  { %v2423_v45 = vmul.f32 0.17677669, %v2419_v40 }
 0xddb   :  { %v3637_v13 = vpop.f32.mrf.mxu1 }
 0xddc   :  { %v2424_v57 = vsel %vm899_vm2, %v2423_v45, -inf }
 0xddd   :  { %2425 = vmax.xlane.f32.xlu0 %v2424_v57 }
 0xde1   :  { %v2672_v59 = vpop.f32.mrf.mxu1 }
 0xde2   :  { %v2676_v1 = vmul.f32 0.17677669, %v2672_v59  ;;  %v3793_v59 = vld [vmem:[#allocation2 + $0x8] sm:$0xff] }
 0xde3   :  { %v3656_v36 = vpop.f32.mrf.mxu1 }
 0xde4   :  { %v2677_v18 = vsel %vm899_vm2, %v2676_v1, -inf }
 0xde6   :  { %2182 = vrot.lane.b32.xlu1 %v4299_v2, %s3844_s12 }
 0xdea   :  { %2186 = vrot.lane.b32.xlu1 %v4370_v62, %s3844_s12 }
 0xdf3   :  { %2184 = vrot.lane.b32.xlu0 %v4364_v9, %s3844_s12 }
 0xdf7   :  { %2435 = vrot.lane.b32.xlu0 %v4401_v17, %s3844_s12 }
 0xdfb   :  { %2439 = vrot.lane.b32.xlu0 %v4452_v47, %s3844_s12 }
 0xe0e   :  { %2678 = vmax.xlane.f32.xlu1 %v2677_v18  ;;  %v2961_v18 = vld [vmem:[%s4926_s7 + $0x78] sm:$0xff] }
 0xe1f   :  { %2188 = vrot.lane.b32.xlu1 %v4933_v20, %s3844_s12  ;;  %v2960_v20 = vld [vmem:[%s4926_s7 + $0x70] sm:$0xff] }
 0xe5e   :  { %v2173_v2 = vpop.xlane.xlu1 %2172 }
 0xe5f   :  { %v2174_v32 = vsub.f32 %v2170_v46, %v2173_v2  ;;  %v2959_v2 = vld [vmem:[%s4926_s7 + $0x68] sm:$0xff] }
 0xe61   :  { %v2175_v60 = vmul.f32 1.442695, %v2174_v32  ;;  %v2958_v32 = vld [vmem:[%s4926_s7 + $0x60] sm:$0xff] }
 0xe62   :  { %v2183_v62 = vpop.permute.xlu1 %2182 }
 0xe63   :  { %3776 = vpow2.f32 %v2175_v60  ;;  %3621 = vmatprep.mubr.msk.f32.mxu0 %vm899_vm2, %v2183_v62 }
 0xe66   :  { %v2426_v47 = vpop.xlane.xlu0 %2425  ;;  %v2187_v34 = vpop.permute.xlu1 %2186 }
 0xe67   :  { %v2427_v53 = vsub.f32 %v2423_v45, %v2426_v47 }
 0xe69   :  { %v2428_v38 = vmul.f32 1.442695, %v2427_v53 }
 0xe6a   :  { %v2185_v10 = vpop.permute.xlu0 %2184 }
 0xe6b   :  { %3778 = vpow2.f32 %v2428_v38 }
 0xe70   :  { %v3777_v9 = vpop.eup %3776 }
 0xe71   :  { %v2177_v17 = vsel %vm899_vm2, %v3777_v9, 0.0 }
 0xe72   :  { %2178 = vadd.xlane.f32.xlu1 %v2177_v17 }
 0xe78   :  { %v3779_v50 = vpop.eup %3778 }
 0xe79   :  { %v2430_v63 = vsel %vm899_vm2, %v3779_v50, 0.0 }
 0xe83   :  { %2437 = vrot.lane.b32.xlu1 %v4446_v43, %s3844_s12  ;;  %v4813_v43 = vld [vmem:[%s4923_s4] ss:$0 sm:$0xff] }
 0xe97   :  { %v2679_v42 = vpop.xlane.xlu1 %2678 }
 0xe98   :  { %v2680_v6 = vsub.f32 %v2676_v1, %v2679_v42  ;;  %v2956_v42 = vld [vmem:[%s4926_s7 + $0x50] sm:$0xff] }
 0xe9a   :  { %v2681_v25 = vmul.f32 1.442695, %v2680_v6  ;;  %v2955_v6 = vld [vmem:[%s4926_s7 + $0x48] sm:$0xff] }
 0xe9c   :  { %3780 = vpow2.f32 %v2681_v25 }
 0xea7   :  { %2431 = vadd.xlane.f32.xlu1 %v2430_v63 }
 0xea9   :  { %v3781_v55 = vpop.eup %3780 }
 0xeaa   :  { %v2683_v26 = vsel %vm899_vm2, %v3781_v55, 0.0 }
 0xeab   :  { %2684 = vadd.xlane.f32.xlu0 %v2683_v26  ;;  %v3209_v26 = vld [vmem:[%s4925_s6] ss:$0 sm:$0xff] }
 0xeb8   :  { %2441 = vrot.lane.b32.xlu1 %v4462_v0, %s3844_s12  ;;  %v2901_v0 = vadd.f32 %v4813_v43, %v4696_v21  ;;  %v2436_v21 = vpop.permute.xlu0 %2435 }
 0xeba   :  { %v4817_v15 = vadd.f32 %v3792_v8, %v2901_v0  ;;  %v2953_v0 = vld [vmem:[%s4926_s7 + $0x38] sm:$0xff] }
 0xebc   :  { %2690 = vrot.lane.b32.xlu1 %v4525_v12, %s3844_s12  ;;  %v2440_v3 = vpop.permute.xlu0 %2439 }
 0xec0   :  { %2694 = vrot.lane.b32.xlu1 %v4534_v14, %s3844_s12 }
 0xec1   :  { %2688 = vrot.lane.b32.xlu0 %v4516_v23, %s3844_s12  ;;  %v2189_v23 = vpop.permute.xlu1 %2188 }
 0xec5   :  { %2692 = vrot.lane.b32.xlu0 %v4528_v33, %s3844_s12 }
 0xee3   :  { %2792 = vxpose.xlu0.b32.start [1/16] (narrow) %v2014_v58, 8 }
 0xee4   :  { %2905 = vadd.xlane.f32.xlu1 %v4817_v15 }
 0xee7   :  { %2793 = vxpose.xlu0.b32.cont [2/16] (narrow) %v3604_v54, 8 }
 0xeeb   :  { %2794 = vxpose.xlu0.b32.cont [3/16] (narrow) %v2024_v24, 8 }
 0xeef   :  { %2795 = vxpose.xlu0.b32.cont [4/16] (narrow) %v3607_v61, 8 }
 0xefb   :  { %v2179_v12 = vpop.xlane.xlu1 %2178 }
 0xefc   :  { %3782 = vrcp.f32 %v2179_v12  ;;  %v2950_v12 = vld [vmem:[%s4926_s7 + $0x20] sm:$0xff] }
 0xeff   :  { %v2438_v22 = vpop.permute.xlu1 %2437 }
 0xf09   :  { %v3783_v33 = vpop.eup %3782 }
 0xf0a   :  { %v2181_v14 = vmul.f32 %v3783_v33, %v3777_v9  ;;  %v2949_v33 = vld [vmem:[%s4926_s7 + $0x18] sm:$0xff] }
 0xf0c   :  { %3619 = vmatprep.subr.msk.mxu0 %vm899_vm2, %v2181_v14 }
 0xf0d   :  { %3620 = vmatpush3.xpose.msk.msra.mxu0 %vm899_vm2, %v2181_v14  ;;  %v2948_v14 = vld [vmem:[%s4926_s7 + $0x10] sm:$0xff] }
 0xf10   :  { %3622 = vmatmul.mubr.msk.f32.vlgmr.msra.gmra.mxu0 %vm899_vm2, %v2185_v10  ;;  %v2947_v10 = vld [vmem:[%s4926_s7 + $0x8] sm:$0xff] }
 0xf11   :  { %3624 = vmatprep.mubr.msk.f32.mxu0 %vm899_vm2, %v2187_v34  ;;  %v2957_v34 = vld [vmem:[%s4926_s7 + $0x58] sm:$0xff] }
 0xf14   :  { %3625 = vmatmul.mubr.msk.f32.gmra.mxu0 %vm899_vm2, %v2189_v23  ;;  %v2951_v23 = vld [vmem:[%s4926_s7 + $0x28] sm:$0xff] }
 0xf15   :  { %3640 = vmatprep.mubr.msk.f32.mxu0 %vm899_vm2, %v2436_v21  ;;  %v2946_v21 = vld [vmem:[%s4926_s7] sm:$0xff] }
 0xf30   :  { %v2432_v4 = vpop.xlane.xlu1 %2431 }
 0xf31   :  { %3784 = vrcp.f32 %v2432_v4 }
 0xf34   :  { %v2685_v7 = vpop.xlane.xlu0 %2684  ;;  %v2442_v56 = vpop.permute.xlu1 %2441 }
 0xf35   :  { %3786 = vrcp.f32 %v2685_v7 }
 0xf38   :  { %v2689_v48 = vpop.permute.xlu0 %2688  ;;  %v2691_v49 = vpop.permute.xlu1 %2690 }
 0xf3c   :  { %v2693_v51 = vpop.permute.xlu0 %2692  ;;  %v2695_v39 = vpop.permute.xlu1 %2694 }
 0xf3e   :  { %v3785_v5 = vpop.eup %3784 }
 0xf3f   :  { %v2434_v28 = vmul.f32 %v3785_v5, %v3779_v50  ;;  %v3208_v50 = vld [vmem:[%s4924_s5] ss:$0 sm:$0xff] }
 0xf41   :  { %3638 = vmatprep.subr.msk.mxu0 %vm899_vm2, %v2434_v28 }
 0xf42   :  { %v3787_v19 = vpop.eup %3786  ;;  %3639 = vmatpush3.xpose.msk.msra.mxu0 %vm899_vm2, %v2434_v28 }
 0xf43   :  { %v2687_v35 = vmul.f32 %v3787_v19, %v3781_v55  ;;  %v2954_v55 = vld [vmem:[%s4926_s7 + $0x40] sm:$0xff] }
 0xf45   :  { %3641 = vmatmul.mubr.msk.f32.vlgmr.msra.gmra.mxu0 %vm899_vm2, %v2438_v22  ;;  %3657 = vmatprep.subr.msk.mxu0 %vm899_vm2, %v2687_v35 }
 0xf46   :  { %3643 = vmatprep.mubr.msk.f32.mxu0 %vm899_vm2, %v2440_v3  ;;  %3658 = vmatpush3.xpose.msk.msra.mxu0 %vm899_vm2, %v2687_v35  ;;  %v3049_v35 = vld [vmem:[%s4928_s9 + $0x18] sm:$0xff] }
 0xf47   :  { %3700 = vmatprep.subr.mxu0 %v2961_v18  ;;  %3735 = vmatprep.subr.mxu1 %v3049_v35 }
 0xf49   :  { %3644 = vmatmul.mubr.msk.f32.gmra.mxu0 %vm899_vm2, %v2442_v56  ;;  %v3048_v56 = vld [vmem:[%s4928_s9 + $0x10] sm:$0xff] }
 0xf4a   :  { %3659 = vmatprep.mubr.msk.f32.mxu0 %vm899_vm2, %v2689_v48  ;;  %v3047_v48 = vld [vmem:[%s4928_s9 + $0x8] sm:$0xff] }
 0xf4d   :  { %3660 = vmatmul.mubr.msk.f32.vlgmr.msra.gmra.mxu0 %vm899_vm2, %v2691_v49  ;;  %v3046_v49 = vld [vmem:[%s4928_s9] sm:$0xff]  ;;  %s3845_s9 = smov [#allocation5]  }
 0xf4e   :  { %3662 = vmatprep.mubr.msk.f32.mxu0 %vm899_vm2, %v2693_v51  ;;  %3701 = vmatpush3.msra.mxu0 %v2961_v18  ;;  %v3210_v51 = vld [vmem:[%s4927_s8] ss:$0 sm:$0xff]  ;;  %s3147_s4 = sshll.u32 %s3845_s9, 4  ;;  %s3148_s4 = int_to_ptr.vmem [resolvable:$true] %s3147_s4 }
 0xf4f   :  { %3702 = vmatprep.subr.mxu0 %v2960_v20  ;;  %s3814_s8 = scalar_lea.vmem %s3148_s4, 256  ;;  %p3819_p6 = scmp.lt.s32.totalorder %s3148_s4, %s3148_s4 }
 0xf50   :  { %3703 = vmatpush3.msra.mxu0 %v2960_v20  ;;  %p3815_p5 = scmp.ne.s32.totalorder %s3148_s4, %s3814_s8  ;;  %p3820_p7 = scmp.lt.s32.totalorder %s3814_s8, %s3814_s8 }
 0xf51   :  { %3663 = vmatmul.mubr.msk.f32.gmra.mxu0 %vm899_vm2, %v2695_v39  ;;  %3704 = vmatprep.subr.mxu0 %v2959_v2 }
 0xf52   :  { %3705 = vmatpush3.msra.mxu0 %v2959_v2  ;;  %p3821_p8 = por %p3820_p7, %p3819_p6 }
 0xf53   :  { %3706 = vmatprep.subr.mxu0 %v2958_v32 }
 0xf54   :  { %3707 = vmatpush3.msra.mxu0 %v2958_v32  ;;  %p3822_p9 = pnand %p3821_p8, %p3815_p5 }
 0xf55   :  { %3708 = vmatprep.subr.mxu0 %v2957_v34 }
 0xf56   :  { %3709 = vmatpush3.msra.mxu0 %v2957_v34 }
 0xf57   :  { %3710 = vmatprep.subr.mxu0 %v2956_v42 }
 0xf58   :  { %3711 = vmatpush3.msra.mxu0 %v2956_v42 }
 0xf59   :  { %3712 = vmatprep.subr.mxu0 %v2955_v6 }
 0xf5a   :  { %3713 = vmatpush3.msra.mxu0 %v2955_v6 }
 0xf5b   :  { %3714 = vmatprep.subr.mxu0 %v2954_v55 }
 0xf5c   :  { %3715 = vmatpush3.msra.mxu0 %v2954_v55 }
 0xf5d   :  { %3716 = vmatprep.subr.mxu0 %v2953_v0 }
 0xf5e   :  { %3717 = vmatpush3.msra.mxu0 %v2953_v0 }
 0xf6d   :  { %v2906_v30 = vpop.xlane.xlu1 %2905 }
 0xf6e   :  { %v2910_v16 = vmul.f32 0.0078125, %v2906_v30 }
 0xf70   :  { %v2912_v57 = vsub.f32 %v4817_v15, %v2910_v16  ;;  %v2952_v15 = vld [vmem:[%s4926_s7 + $0x30] sm:$0xff] }
 0xf71   :  { %3718 = vmatprep.subr.mxu0 %v2952_v15 }
 0xf72   :  { %v2914_v1 = vmul.f32 %v2912_v57, %v2912_v57  ;;  %3719 = vmatpush3.msra.mxu0 %v2952_v15 }
 0xf73   :  { %3720 = vmatprep.subr.mxu0 %v2951_v23 }
 0xf74   :  { %3721 = vmatpush3.msra.mxu0 %v2951_v23 }
 0xf75   :  { %3722 = vmatprep.subr.mxu0 %v2950_v12 }
 0xf76   :  { %3723 = vmatpush3.msra.mxu0 %v2950_v12 }
 0xf77   :  { %3724 = vmatprep.subr.mxu0 %v2949_v33 }
 0xf78   :  { %3725 = vmatpush3.msra.mxu0 %v2949_v33 }
 0xf79   :  { %3726 = vmatprep.subr.mxu0 %v2948_v14 }
 0xf7a   :  { %3727 = vmatpush3.msra.mxu0 %v2948_v14 }
 0xf7b   :  { %3728 = vmatprep.subr.mxu0 %v2947_v10 }
 0xf7c   :  { %3729 = vmatpush3.msra.mxu0 %v2947_v10 }
 0xf7d   :  { %3730 = vmatprep.subr.mxu0 %v2946_v21 }
 0xf7e   :  { %3731 = vmatpush3.msra.mxu0 %v2946_v21 }
 0xfd0   :  { %v3623_v27 = vpop.f32.mrf.mxu0 }
 0xfd2   :  { %v2267_v52 = vpop.f32.mrf.mxu0 }
 0xfd3   :  { %2796 = vxpose.xlu0.b32.cont [5/16] (narrow) %v2267_v52, 8 }
 0xfd4   :  { %v3626_v11 = vpop.f32.mrf.mxu0 }
 0xfd6   :  { %v2277_v31 = vpop.f32.mrf.mxu0 }
 0xfd7   :  { %2797 = vxpose.xlu0.b32.cont [6/16] (narrow) %v3623_v27, 8 }
 0xfdb   :  { %2798 = vxpose.xlu0.b32.cont [7/16] (narrow) %v2277_v31, 8 }
 0xfdf   :  { %2799 = vxpose.xlu0.b32.cont [8/16] (narrow) %v3626_v11, 8 }
0x1005   :  { %v3642_v41 = vpop.f32.mrf.mxu0 }
0x1007   :  { %v2520_v37 = vpop.f32.mrf.mxu0 }
0x1008   :  { %2800 = vxpose.xlu0.b32.cont [9/16] (narrow) %v2520_v37, 8  ;;  %v3211_v37 = vld [vmem:[%s4929_s10] ss:$0 sm:$0xff] }
0x1009   :  { %v3645_v29 = vpop.f32.mrf.mxu0 }
0x100b   :  { %v2530_v54 = vpop.f32.mrf.mxu0 }
0x100c   :  { %2801 = vxpose.xlu0.b32.cont [10/16] (narrow) %v3642_v41, 8 }
0x100d   :  { %v3661_v58 = vpop.f32.mrf.mxu0 }
0x100f   :  { %v2773_v61 = vpop.f32.mrf.mxu0 }
0x1010   :  { %2802 = vxpose.xlu0.b32.cont [11/16] (narrow) %v2530_v54, 8 }
0x1011   :  { %v3664_v24 = vpop.f32.mrf.mxu0 }
0x1013   :  { %v2783_v44 = vpop.f32.mrf.mxu0 }
0x1014   :  { %2803 = vxpose.xlu0.b32.cont [12/16] (narrow) %v3645_v29, 8 }
0x1018   :  { %2804 = vxpose.xlu0.b32.cont [13/16] (narrow) %v2773_v61, 8 }
0x101c   :  { %2805 = vxpose.xlu0.b32.cont [14/16] (narrow) %v3661_v58, 8 }
0x1020   :  { %2806 = vxpose.xlu0.b32.cont [15/16] (narrow) %v2783_v44, 8 }
0x1024   :  { %2807 = vxpose.xlu0.b32.end [16/16] (narrow) %v3664_v24, 8 }
0x1064   :  { %v2808_v46 = vpop.trf.xlu0 }
0x1065   :  { %3698 = vmatmul.mubr.f32.vlgmr.msra.gmra.mxu1 %v2808_v46 }
0x1066   :  { %3736 = vmatpush3.msra.mxu1 %v3049_v35 }
0x1067   :  { %3737 = vmatprep.subr.mxu1 %v3048_v56 }
0x1068   :  { %3738 = vmatpush3.msra.mxu1 %v3048_v56 }
0x1069   :  { %3739 = vmatprep.subr.mxu1 %v3047_v48 }
0x106a   :  { %3740 = vmatpush3.msra.mxu1 %v3047_v48 }
0x106b   :  { %3741 = vmatprep.subr.mxu1 %v3046_v49 }
0x106c   :  { %3742 = vmatpush3.msra.mxu1 %v3046_v49 }
0x1125   :  { %v2890_v40 = vpop.f32.mrf.mxu1 }
0x1126   :  { %v2902_v45 = vadd.f32 %v4813_v43, %v2890_v40 }
0x1127   :  { %v3699_v13 = vpop.f32.mrf.mxu1 }
0x1128   :  { %v2904_v36 = vadd.f32 %v3793_v59, %v2902_v45 }
0x112a   :  { %2907 = vadd.xlane.f32.xlu1 %v2904_v36 }
0x112e   :  { %2916 = vadd.xlane.f32.xlu1 %v2914_v1 }
0x11b3   :  { %v2908_v60 = vpop.xlane.xlu1 %2907 }
0x11b4   :  { %v2911_v62 = vmul.f32 0.0078125, %v2908_v60 }
0x11b6   :  { %v2913_v9 = vsub.f32 %v2904_v36, %v2911_v62 }
0x11b7   :  { %v2917_v17 = vpop.xlane.xlu1 %2916 }
0x11b8   :  { %v2920_v47 = vmul.f32 0.0078125, %v2917_v17  ;;  %v2915_v53 = vmul.f32 %v2913_v9, %v2913_v9 }
0x11ba   :  { %v2922_v38 = vadd.f32 1e-05, %v2920_v47  ;;  %2918 = vadd.xlane.f32.xlu1 %v2915_v53 }
0x11bc   :  { %3788 = vrsqrt.f32 %v2922_v38 }
0x11c9   :  { %v3789_v25 = vpop.eup %3788 }
0x11ca   :  { %v2926_v63 = vmul.f32 %v3789_v25, %v2912_v57 }
0x11cc   :  { %v2935_v43 = vmul.f32 %v3208_v50, %v2926_v63 }
0x11ce   :  { %v2944_v8 = vadd.f32 %v3209_v26, %v2935_v43 }
0x11d0   :  { %3732 = vmatprep.mubr.f32.mxu0 %v2944_v8 }
0x1243   :  { %v2919_v22 = vpop.xlane.xlu1 %2918 }
0x1244   :  { %v2921_v3 = vmul.f32 0.0078125, %v2919_v22 }
0x1246   :  { %v2923_v4 = vadd.f32 1e-05, %v2921_v3 }
0x1248   :  { %3790 = vrsqrt.f32 %v2923_v4 }
0x1255   :  { %v3791_v7 = vpop.eup %3790 }
0x1256   :  { %v2927_v5 = vmul.f32 %v3791_v7, %v2913_v9 }
0x1258   :  { %v2936_v28 = vmul.f32 %v3208_v50, %v2927_v5 }
0x125a   :  { %v2945_v19 = vadd.f32 %v3209_v26, %v2936_v28 }
0x125c   :  { %3733 = vmatmul.mubr.f32.vlgmr.msra.gmra.mxu0 %v2945_v19 }
0x131c   :  { %v3734_v39 = vpop.f32.mrf.mxu0 }
0x131d   :  { %v3041_v27 = vadd.f32 %v3734_v39, %v3210_v51 }
0x131e   :  { %v3035_v52 = vpop.f32.mrf.mxu0 }
0x131f   :  { %v3036_v11 = vadd.f32 %v3210_v51, %v3035_v52  ;;  %v3045_v41 = vmax.f32 %v3041_v27, 0.0 }
0x1321   :  { %v3044_v31 = vmax.f32 %v3036_v11, 0.0 }
0x1323   :  { %3743 = vmatprep.mubr.msk.f32.mxu1 %vm824_vm1, %v3044_v31 }
0x1324   :  { %3744 = vmatmul.mubr.msk.f32.vlgmr.msra.gmra.mxu1 %vm824_vm1, %v3045_v41 }
0x13e4   :  { %v3745_v29 = vpop.f32.mrf.mxu1 }
0x13e5   :  { %v3135_v54 = vadd.f32 %v3745_v29, %v3211_v37 }
0x13e6   :  { %v3129_v58 = vpop.f32.mrf.mxu1 }
0x13e7   :  { %v3139_v61 = vmax.f32 %v3135_v54, 0.0  ;;  %v3130_v24 = vadd.f32 %v3211_v37, %v3129_v58 }
0x13e9   :  { %3141 = vst [vmem:[#allocation5 + $0x8] sm:$0xff] %v3139_v61  ;;  %v3138_v44 = vmax.f32 %v3130_v24, 0.0 }
0x13eb   :  { %3140 = vst [vmem:[#allocation5] sm:$0xff] %v3138_v44 }
0x13ec   :  { %3825 = shalt.err (!%p3822_p9)
}
0x13ed   :  { %3153 = dma.vmem_to_hbm [thread:$0]  %s3148_s4, 256, %s4930_s11, [#allocation4], %s3839_s20, %s3839_s20, %s3840_s21  }
0x13ee   :  { %3836 = dma.done.wait [#allocation4], 256  }
0x13ef   :  { %3837 = vsyncadd [#allocation4], 4294967040 }
0x13f0   :  { %3157 = vsyncpa [#allocation3], 1 }
0x13f1   :  { %3158 = vsyncpa [#allocation4], 1 }

</bundles_post_ra>
